<compile_context>
chip_gen: v7x
topology: tpu7x:2x2x1
jax: 0.10.0
libtpu: 0.0.40
codegen_flags: <defaults>
</compile_context>

<pallas_src>
import numpy as np
import jax
import jax.numpy as jnp
from jax.experimental import pallas as pl
from jax.experimental.pallas import tpu as pltpu

LANE = 128
SUBLANE = 8


def _round_up(x, m):
    return ((x + m - 1) // m) * m


def _cdiv(a, b):
    return (a + b - 1) // b


# ---------------------------------------------------------------------------
# Kernel
# ---------------------------------------------------------------------------
def actor_kernel(x_ref, w1_ref, b1_ref, w2_ref, b2_ref, w3_ref, b3_ref, out_ref):
    """Fused forward: tanh(relu(relu(x@W1+b1)@W2+b2)@W3+b3).

    bf16 weights + bf16-stored activations feed the MXU; accumulation is f32;
    bias-add / relu / tanh are f32 on the VPU (v5e-safe elementwise path).
    """
    x = x_ref[...].astype(jnp.bfloat16)

    h1 = jnp.dot(x, w1_ref[...], preferred_element_type=jnp.float32) + b1_ref[...]
    h1 = jnp.maximum(h1, 0.0).astype(jnp.bfloat16)   # store (TM,H1p) as bf16

    h2 = jnp.dot(h1, w2_ref[...], preferred_element_type=jnp.float32) + b2_ref[...]
    h2 = jnp.maximum(h2, 0.0).astype(jnp.bfloat16)   # store (TM,H2p) as bf16

    h3 = jnp.dot(h2, w3_ref[...], preferred_element_type=jnp.float32) + b3_ref[...]
    out_ref[...] = jnp.tanh(h3)


# ---------------------------------------------------------------------------
# Parameter init (mirrors Actor.reset_parameters) and packing (pad + bf16)
# ---------------------------------------------------------------------------
def init_actor_params(key, state_size, action_size, fc1_units=400, fc2_units=300):
    """Deterministic init mirroring Actor.reset_parameters().

    hidden_init() in the reference uses weight.size()[0] (== out_features) for
    the uniform limit — we reproduce that quirk.  Biases keep PyTorch's default
    Linear init: U(-1/sqrt(fan_in), 1/sqrt(fan_in)).  Weights are stored
    (in_features, out_features) so the kernel computes x @ W.
    """
    k = jax.random.split(key, 6)

    def unif(k_, shape, lim):
        return jax.random.uniform(k_, shape, jnp.float32, -lim, lim)

    lim1 = 1.0 / np.sqrt(fc1_units)   # hidden_init(fc1): weight.size()[0] == fc1_units
    lim2 = 1.0 / np.sqrt(fc2_units)   # hidden_init(fc2)
    lim3 = 3e-3

    w1 = unif(k[0], (state_size, fc1_units), lim1)
    b1 = unif(k[1], (1, fc1_units), 1.0 / np.sqrt(state_size))
    w2 = unif(k[2], (fc1_units, fc2_units), lim2)
    b2 = unif(k[3], (1, fc2_units), 1.0 / np.sqrt(fc1_units))
    w3 = unif(k[4], (fc2_units, action_size), lim3)
    b3 = unif(k[5], (1, action_size), 1.0 / np.sqrt(fc2_units))
    return (w1, b1, w2, b2, w3, b3)


def pack_actor_params(params):
    """Zero-pad hidden/action dims to multiples of 128 and cast weights to bf16.

    Zero padding is exact: padded h1/h2 columns are relu(0+0)=0 and hit zero
    rows of the next weight; padded output columns are tanh(0)=0 and sliced
    off by the wrapper.
    """
    w1, b1, w2, b2, w3, b3 = params
    h1 = w1.shape[1]
    h2 = w2.shape[1]
    a = w3.shape[1]
    h1p = _round_up(h1, LANE)
    h2p = _round_up(h2, LANE)
    ap = _round_up(a, LANE)

    def pad_w(w, rpad, cpad):
        return jnp.pad(w, ((0, rpad), (0, cpad))).astype(jnp.bfloat16)

    def pad_b(b, cpad):
        return jnp.pad(b, ((0, 0), (0, cpad))).astype(jnp.float32)

    packed = (
        pad_w(w1, 0, h1p - h1), pad_b(b1, h1p - h1),
        pad_w(w2, h1p - h1, h2p - h2), pad_b(b2, h2p - h2),
        pad_w(w3, h2p - h2, ap - a), pad_b(b3, ap - a),
    )
    return packed, a


# ---------------------------------------------------------------------------
# Tiling policy (generation aware) and pallas_call builder
# ---------------------------------------------------------------------------
def _tile_policy():
    """Row-tile cap and minimum grid-step count for the current TPU generation."""
    try:
        kind = jax.devices()[0].device_kind.lower()
    except Exception:  # pragma: no cover - defensive
        kind = ""
    is_v5e = ("v5 lite" in kind) or ("v5e" in kind) or ("v5litepod" in kind)
    is_v7 = ("v7" in kind) or ("tpu7" in kind)
    # v5e: single vst slot / slower MXU -> prefer more, smaller tiles.
    tm_cap = 256 if is_v5e else 512
    # v7x: 2 TensorCores/chip -> need >=2 grid steps for "parallel" to matter.
    min_tiles = 2 if is_v7 else 1
    return tm_cap, min_tiles


def _choose_tiles(batch):
    tm_cap, min_tiles = _tile_policy()
    if batch < 16:
        min_tiles = 1
    ntiles = max(min_tiles, _cdiv(batch, tm_cap))
    tm = _round_up(_cdiv(batch, ntiles), SUBLANE)
    return tm, ntiles * tm, ntiles


def _build_actor_call(TM, S, H1p, H2p, Ap, Bp, ntiles, single_buffer_weights):
    const = lambda i: (0, 0)
    if single_buffer_weights:
        # Constant-index blocks are fetched once; drop the dead second buffer.
        wspec = lambda shape: pl.BlockSpec(shape, const, pipeline_mode=pl.Buffered(1))
    else:
        wspec = lambda shape: pl.BlockSpec(shape, const)

    flops = 2 * Bp * (S * H1p + H1p * H2p + H2p * Ap)
    bytes_accessed = (
        Bp * S * 4 + Bp * Ap * 4                       # x in, out (f32)
        + (S * H1p + H1p * H2p + H2p * Ap) * 2         # bf16 weights
        + (H1p + H2p + Ap) * 4                         # f32 biases
    )
    cost = pl.CostEstimate(flops=flops, transcendentals=Bp * Ap,
                           bytes_accessed=bytes_accessed)

    return pl.pallas_call(
        actor_kernel,
        out_shape=jax.ShapeDtypeStruct((Bp, Ap), jnp.float32),
        grid_spec=pltpu.PrefetchScalarGridSpec(
            num_scalar_prefetch=0,
            grid=(ntiles,),
            in_specs=[
                pl.BlockSpec((TM, S), lambda i: (i, 0)),   # x: batch-tiled
                wspec((S, H1p)), wspec((1, H1p)),          # weights/biases:
                wspec((H1p, H2p)), wspec((1, H2p)),        # constant block index,
                wspec((H2p, Ap)), wspec((1, Ap)),          # VMEM-resident
            ],
            out_specs=pl.BlockSpec((TM, Ap), lambda i: (i, 0)),  # lane-dense out
        ),
        compiler_params=pltpu.CompilerParams(
            dimension_semantics=("parallel",),   # batch tiles split across TCs
        ),
        cost_estimate=cost,
    )


# Resolved on first call: whether pl.Buffered(1) on the weight specs lowers
# cleanly on this install.  Falls back to default double-buffered specs if not.
_WEIGHTS_SINGLE_BUFFER_OK = None


# ---------------------------------------------------------------------------
# Forward wrapper
# ---------------------------------------------------------------------------
def actor_forward(state, packed_params, action_size):
    """Mirrors Actor.forward (use_bn=False path) on padded/bf16 params."""
    global _WEIGHTS_SINGLE_BUFFER_OK

    if state.ndim == 1:
        state = state[None, :]          # state.unsqueeze(0)
    state = state.astype(jnp.float32)

    w1, b1, w2, b2, w3, b3 = packed_params
    B, S = state.shape
    assert S == w1.shape[0], "state feature dim mismatch"
    H1p, H2p, Ap = w1.shape[1], w2.shape[1], w3.shape[1]

    TM, Bp, ntiles = _choose_tiles(B)
    x = state if Bp == B else jnp.pad(state, ((0, Bp - B), (0, 0)))

    def run(single_buffer):
        call = _build_actor_call(TM, S, H1p, H2p, Ap, Bp, ntiles, single_buffer)
        return call(x, w1, b1, w2, b2, w3, b3)

    if _WEIGHTS_SINGLE_BUFFER_OK is None:
        try:
            out = run(True)
            jax.block_until_ready(out)
            _WEIGHTS_SINGLE_BUFFER_OK = True
        except Exception:
            _WEIGHTS_SINGLE_BUFFER_OK = False
            out = run(False)
    else:
        out = run(_WEIGHTS_SINGLE_BUFFER_OK)

    return out[:B, :action_size]


# ---------------------------------------------------------------------------
# Demo / self-check
# ---------------------------------------------------------------------------
if __name__ == "__main__":
    key = jax.random.PRNGKey(0)
    state_size, action_size = 32, 4
    fc1_units, fc2_units = 400, 300

    pkey, xkey1, xkey2 = jax.random.split(key, 3)
    raw_params = init_actor_params(pkey, state_size, action_size,
                                   fc1_units, fc2_units)
    packed_params, _ = pack_actor_params(raw_params)

    def ref_forward(x, packed):
        """Same math (bf16 weights/activations, f32 accumulate) via plain XLA."""
        w1, b1, w2, b2, w3, b3 = packed
        h1 = jnp.maximum(jnp.dot(x.astype(jnp.bfloat16), w1,
                                 preferred_element_type=jnp.float32) + b1, 0.0)
        h2 = jnp.maximum(jnp.dot(h1.astype(jnp.bfloat16), w2,
                                 preferred_element_type=jnp.float32) + b2, 0.0)
        h3 = jnp.dot(h2.astype(jnp.bfloat16), w3,
                     preferred_element_type=jnp.float32) + b3
        return jnp.tanh(h3)[:, :action_size]

    def f32_forward(x, raw):
        w1, b1, w2, b2, w3, b3 = raw
        return jnp.tanh(
            jnp.maximum(jnp.maximum(x @ w1 + b1, 0.0) @ w2 + b2, 0.0) @ w3 + b3)

    ok = True
    # Small case (batch=2) and a larger awkward one (batch=300) that exercises
    # adaptive tiling, grid > 1 (on v7x / v5e) and row padding.
    for bsz, xk in ((2, xkey1), (300, xkey2)):
        state = jax.random.normal(xk, (bsz, state_size), dtype=jnp.float32)
        actions = actor_forward(state, packed_params, action_size)
        jax.block_until_ready(actions)

        ref = ref_forward(state, packed_params)       # exact-path reference
        ref_f32 = f32_forward(state, raw_params)      # unquantized reference

        ok &= actions.shape == (bsz, action_size)
        ok &= bool(jnp.allclose(actions, ref, atol=1e-4))
        ok &= bool(jnp.allclose(actions, ref_f32, atol=5e-2))  # bf16 quantization
        ok &= bool(jnp.all(jnp.abs(actions) <= 1.0))

    assert ok, "mismatch vs reference"
    print("KERNEL_OK")
</pallas_src>

<mosaic_0001>
module attributes {stable_mosaic.version = 11 : i64} {
  func.func @actor_kernel(%arg0: i32, %arg1: memref<8x32xf32, #tpu.memory_space<vmem>>, %arg2: memref<32x512xbf16, #tpu.memory_space<vmem>>, %arg3: memref<1x512xf32, #tpu.memory_space<vmem>>, %arg4: memref<512x384xbf16, #tpu.memory_space<vmem>>, %arg5: memref<1x384xf32, #tpu.memory_space<vmem>>, %arg6: memref<384x128xbf16, #tpu.memory_space<vmem>>, %arg7: memref<1x128xf32, #tpu.memory_space<vmem>>, %arg8: memref<8x128xf32, #tpu.memory_space<vmem>>) attributes {dimension_semantics = [#tpu.dimension_semantics<parallel>], iteration_bounds = array<i64: 1>, scalar_prefetch = 0 : i64, scratch_operands = 0 : i64, tpu.core_type = #tpu.core_type<tc>, window_params = [{transform_indices = @transform_0, window_bounds = array<i64: 8, 32>}, {pipeline_mode = #tpu.pipeline_mode<synchronous>, transform_indices = @transform_1, window_bounds = array<i64: 32, 512>}, {pipeline_mode = #tpu.pipeline_mode<synchronous>, transform_indices = @transform_2, window_bounds = array<i64: 1, 512>}, {pipeline_mode = #tpu.pipeline_mode<synchronous>, transform_indices = @transform_3, window_bounds = array<i64: 512, 384>}, {pipeline_mode = #tpu.pipeline_mode<synchronous>, transform_indices = @transform_4, window_bounds = array<i64: 1, 384>}, {pipeline_mode = #tpu.pipeline_mode<synchronous>, transform_indices = @transform_5, window_bounds = array<i64: 384, 128>}, {pipeline_mode = #tpu.pipeline_mode<synchronous>, transform_indices = @transform_6, window_bounds = array<i64: 1, 128>}, {transform_indices = @transform_7, window_bounds = array<i64: 8, 128>}]} {
    %c0 = arith.constant 0 : index
    %c0_0 = arith.constant 0 : index
    %0 = vector.load %arg1[%c0, %c0_0] : memref<8x32xf32, #tpu.memory_space<vmem>>, vector<8x32xf32>
    %1 = arith.truncf %0 : vector<8x32xf32> to vector<8x32xbf16>
    %c0_1 = arith.constant 0 : index
    %c0_2 = arith.constant 0 : index
    %2 = vector.load %arg2[%c0_1, %c0_2] : memref<32x512xbf16, #tpu.memory_space<vmem>>, vector<32x512xbf16>
    %cst = arith.constant dense<0.000000e+00> : vector<8x512xf32>
    %3 = tpu.matmul %1, %2, %cst {dimension_numbers = #tpu.dot_dimension_numbers<[1], [0], [0], [1], [0, 0, 1, 1], [], []>} : vector<8x32xbf16>, vector<32x512xbf16>, vector<8x512xf32> -> vector<8x512xf32>
    %c0_3 = arith.constant 0 : index
    %c0_4 = arith.constant 0 : index
    %4 = vector.load %arg3[%c0_3, %c0_4] : memref<1x512xf32, #tpu.memory_space<vmem>>, vector<1x512xf32>
    %5 = vector.broadcast %4 : vector<1x512xf32> to vector<8x512xf32>
    %6 = arith.addf %3, %5 : vector<8x512xf32>
    %cst_5 = arith.constant 0.000000e+00 : f32
    %7 = vector.broadcast %cst_5 : f32 to vector<8x512xf32>
    %8 = arith.maximumf %6, %7 : vector<8x512xf32>
    %9 = arith.truncf %8 : vector<8x512xf32> to vector<8x512xbf16>
    %c0_6 = arith.constant 0 : index
    %c0_7 = arith.constant 0 : index
    %10 = vector.load %arg4[%c0_6, %c0_7] : memref<512x384xbf16, #tpu.memory_space<vmem>>, vector<512x384xbf16>
    %cst_8 = arith.constant dense<0.000000e+00> : vector<8x384xf32>
    %11 = tpu.matmul %9, %10, %cst_8 {dimension_numbers = #tpu.dot_dimension_numbers<[1], [0], [0], [1], [0, 0, 1, 1], [], []>} : vector<8x512xbf16>, vector<512x384xbf16>, vector<8x384xf32> -> vector<8x384xf32>
    %c0_9 = arith.constant 0 : index
    %c0_10 = arith.constant 0 : index
    %12 = vector.load %arg5[%c0_9, %c0_10] : memref<1x384xf32, #tpu.memory_space<vmem>>, vector<1x384xf32>
    %13 = vector.broadcast %12 : vector<1x384xf32> to vector<8x384xf32>
    %14 = arith.addf %11, %13 : vector<8x384xf32>
    %cst_11 = arith.constant 0.000000e+00 : f32
    %15 = vector.broadcast %cst_11 : f32 to vector<8x384xf32>
    %16 = arith.maximumf %14, %15 : vector<8x384xf32>
    %17 = arith.truncf %16 : vector<8x384xf32> to vector<8x384xbf16>
    %c0_12 = arith.constant 0 : index
    %c0_13 = arith.constant 0 : index
    %18 = vector.load %arg6[%c0_12, %c0_13] : memref<384x128xbf16, #tpu.memory_space<vmem>>, vector<384x128xbf16>
    %cst_14 = arith.constant dense<0.000000e+00> : vector<8x128xf32>
    %19 = tpu.matmul %17, %18, %cst_14 {dimension_numbers = #tpu.dot_dimension_numbers<[1], [0], [0], [1], [0, 0, 1, 1], [], []>} : vector<8x384xbf16>, vector<384x128xbf16>, vector<8x128xf32> -> vector<8x128xf32>
    %c0_15 = arith.constant 0 : index
    %c0_16 = arith.constant 0 : index
    %20 = vector.load %arg7[%c0_15, %c0_16] : memref<1x128xf32, #tpu.memory_space<vmem>>, vector<1x128xf32>
    %21 = vector.broadcast %20 : vector<1x128xf32> to vector<8x128xf32>
    %22 = arith.addf %19, %21 : vector<8x128xf32>
    %23 = math.tanh %22 : vector<8x128xf32>
    %c0_17 = arith.constant 0 : index
    %c0_18 = arith.constant 0 : index
    %24 = vector.load %arg8[%c0_17, %c0_18] : memref<8x128xf32, #tpu.memory_space<vmem>>, vector<8x128xf32>
    tpu.vector_store %arg8[%c0_17, %c0_18], %23 {strides = array<i32>} : memref<8x128xf32, #tpu.memory_space<vmem>>, vector<8x128xf32>,
    return
  }
  func.func @transform_0(%arg0: i32) -> (i32, i32) {
    %c0_i32 = arith.constant 0 : i32
    %c0_i32_0 = arith.constant 0 : i32
    return %arg0, %c0_i32 : i32, i32
  }
  func.func @transform_1(%arg0: i32) -> (i32, i32) {
    %c0_i32 = arith.constant 0 : i32
    %c0_i32_0 = arith.constant 0 : i32
    %c0_i32_1 = arith.constant 0 : i32
    return %c0_i32, %c0_i32_0 : i32, i32
  }
  func.func @transform_2(%arg0: i32) -> (i32, i32) {
    %c0_i32 = arith.constant 0 : i32
    %c0_i32_0 = arith.constant 0 : i32
    %c0_i32_1 = arith.constant 0 : i32
    return %c0_i32, %c0_i32_0 : i32, i32
  }
  func.func @transform_3(%arg0: i32) -> (i32, i32) {
    %c0_i32 = arith.constant 0 : i32
    %c0_i32_0 = arith.constant 0 : i32
    %c0_i32_1 = arith.constant 0 : i32
    return %c0_i32, %c0_i32_0 : i32, i32
  }
  func.func @transform_4(%arg0: i32) -> (i32, i32) {
    %c0_i32 = arith.constant 0 : i32
    %c0_i32_0 = arith.constant 0 : i32
    %c0_i32_1 = arith.constant 0 : i32
    return %c0_i32, %c0_i32_0 : i32, i32
  }
  func.func @transform_5(%arg0: i32) -> (i32, i32) {
    %c0_i32 = arith.constant 0 : i32
    %c0_i32_0 = arith.constant 0 : i32
    %c0_i32_1 = arith.constant 0 : i32
    return %c0_i32, %c0_i32_0 : i32, i32
  }
  func.func @transform_6(%arg0: i32) -> (i32, i32) {
    %c0_i32 = arith.constant 0 : i32
    %c0_i32_0 = arith.constant 0 : i32
    %c0_i32_1 = arith.constant 0 : i32
    return %c0_i32, %c0_i32_0 : i32, i32
  }
  func.func @transform_7(%arg0: i32) -> (i32, i32) {
    %c0_i32 = arith.constant 0 : i32
    %c0_i32_0 = arith.constant 0 : i32
    return %arg0, %c0_i32 : i32, i32
  }
}

module attributes {stable_mosaic.version = 11 : i64} {
  func.func @actor_kernel(%arg0: i32, %arg1: memref<8x32xf32, #tpu.memory_space<vmem>>, %arg2: memref<32x512xbf16, #tpu.memory_space<vmem>>, %arg3: memref<1x512xf32, #tpu.memory_space<vmem>>, %arg4: memref<512x384xbf16, #tpu.memory_space<vmem>>, %arg5: memref<1x384xf32, #tpu.memory_space<vmem>>, %arg6: memref<384x128xbf16, #tpu.memory_space<vmem>>, %arg7: memref<1x128xf32, #tpu.memory_space<vmem>>, %arg8: memref<8x128xf32, #tpu.memory_space<vmem>>) attributes {dimension_semantics = [#tpu.dimension_semantics<parallel>], iteration_bounds = array<i64: 1>, scalar_prefetch = 0 : i64, scratch_operands = 0 : i64, tpu.core_type = #tpu.core_type<tc>, window_params = [{transform_indices = @transform_0, window_bounds = array<i64: 8, 32>}, {pipeline_mode = #tpu.pipeline_mode<synchronous>, transform_indices = @transform_1, window_bounds = array<i64: 32, 512>}, {pipeline_mode = #tpu.pipeline_mode<synchronous>, transform_indices = @transform_2, window_bounds = array<i64: 1, 512>}, {pipeline_mode = #tpu.pipeline_mode<synchronous>, transform_indices = @transform_3, window_bounds = array<i64: 512, 384>}, {pipeline_mode = #tpu.pipeline_mode<synchronous>, transform_indices = @transform_4, window_bounds = array<i64: 1, 384>}, {pipeline_mode = #tpu.pipeline_mode<synchronous>, transform_indices = @transform_5, window_bounds = array<i64: 384, 128>}, {pipeline_mode = #tpu.pipeline_mode<synchronous>, transform_indices = @transform_6, window_bounds = array<i64: 1, 128>}, {transform_indices = @transform_7, window_bounds = array<i64: 8, 128>}]} {
    %c0 = arith.constant 0 : index
    %c0_0 = arith.constant 0 : index
    %0 = vector.load %arg1[%c0, %c0_0] : memref<8x32xf32, #tpu.memory_space<vmem>>, vector<8x32xf32>
    %1 = arith.truncf %0 : vector<8x32xf32> to vector<8x32xbf16>
    %c0_1 = arith.constant 0 : index
    %c0_2 = arith.constant 0 : index
    %2 = vector.load %arg2[%c0_1, %c0_2] : memref<32x512xbf16, #tpu.memory_space<vmem>>, vector<32x512xbf16>
    %cst = arith.constant dense<0.000000e+00> : vector<8x512xf32>
    %3 = tpu.matmul %1, %2, %cst {dimension_numbers = #tpu.dot_dimension_numbers<[1], [0], [0], [1], [0, 0, 1, 1], [], []>} : vector<8x32xbf16>, vector<32x512xbf16>, vector<8x512xf32> -> vector<8x512xf32>
    %c0_3 = arith.constant 0 : index
    %c0_4 = arith.constant 0 : index
    %4 = vector.load %arg3[%c0_3, %c0_4] : memref<1x512xf32, #tpu.memory_space<vmem>>, vector<1x512xf32>
    %5 = vector.broadcast %4 : vector<1x512xf32> to vector<8x512xf32>
    %6 = arith.addf %3, %5 : vector<8x512xf32>
    %cst_5 = arith.constant 0.000000e+00 : f32
    %7 = vector.broadcast %cst_5 : f32 to vector<8x512xf32>
    %8 = arith.maximumf %6, %7 : vector<8x512xf32>
    %9 = arith.truncf %8 : vector<8x512xf32> to vector<8x512xbf16>
    %c0_6 = arith.constant 0 : index
    %c0_7 = arith.constant 0 : index
    %10 = vector.load %arg4[%c0_6, %c0_7] : memref<512x384xbf16, #tpu.memory_space<vmem>>, vector<512x384xbf16>
    %cst_8 = arith.constant dense<0.000000e+00> : vector<8x384xf32>
    %11 = tpu.matmul %9, %10, %cst_8 {dimension_numbers = #tpu.dot_dimension_numbers<[1], [0], [0], [1], [0, 0, 1, 1], [], []>} : vector<8x512xbf16>, vector<512x384xbf16>, vector<8x384xf32> -> vector<8x384xf32>
    %c0_9 = arith.constant 0 : index
    %c0_10 = arith.constant 0 : index
    %12 = vector.load %arg5[%c0_9, %c0_10] : memref<1x384xf32, #tpu.memory_space<vmem>>, vector<1x384xf32>
    %13 = vector.broadcast %12 : vector<1x384xf32> to vector<8x384xf32>
    %14 = arith.addf %11, %13 : vector<8x384xf32>
    %cst_11 = arith.constant 0.000000e+00 : f32
    %15 = vector.broadcast %cst_11 : f32 to vector<8x384xf32>
    %16 = arith.maximumf %14, %15 : vector<8x384xf32>
    %17 = arith.truncf %16 : vector<8x384xf32> to vector<8x384xbf16>
    %c0_12 = arith.constant 0 : index
    %c0_13 = arith.constant 0 : index
    %18 = vector.load %arg6[%c0_12, %c0_13] : memref<384x128xbf16, #tpu.memory_space<vmem>>, vector<384x128xbf16>
    %cst_14 = arith.constant dense<0.000000e+00> : vector<8x128xf32>
    %19 = tpu.matmul %17, %18, %cst_14 {dimension_numbers = #tpu.dot_dimension_numbers<[1], [0], [0], [1], [0, 0, 1, 1], [], []>} : vector<8x384xbf16>, vector<384x128xbf16>, vector<8x128xf32> -> vector<8x128xf32>
    %c0_15 = arith.constant 0 : index
    %c0_16 = arith.constant 0 : index
    %20 = vector.load %arg7[%c0_15, %c0_16] : memref<1x128xf32, #tpu.memory_space<vmem>>, vector<1x128xf32>
    %21 = vector.broadcast %20 : vector<1x128xf32> to vector<8x128xf32>
    %22 = arith.addf %19, %21 : vector<8x128xf32>
    %23 = math.tanh %22 : vector<8x128xf32>
    %c0_17 = arith.constant 0 : index
    %c0_18 = arith.constant 0 : index
    %24 = vector.load %arg8[%c0_17, %c0_18] : memref<8x128xf32, #tpu.memory_space<vmem>>, vector<8x128xf32>
    tpu.vector_store %arg8[%c0_17, %c0_18], %23 {strides = array<i32>} : memref<8x128xf32, #tpu.memory_space<vmem>>, vector<8x128xf32>,
    return
  }
  func.func @transform_0(%arg0: i32) -> (i32, i32) {
    %c0_i32 = arith.constant 0 : i32
    %c0_i32_0 = arith.constant 0 : i32
    return %arg0, %c0_i32 : i32, i32
  }
  func.func @transform_1(%arg0: i32) -> (i32, i32) {
    %c0_i32 = arith.constant 0 : i32
    %c0_i32_0 = arith.constant 0 : i32
    %c0_i32_1 = arith.constant 0 : i32
    return %c0_i32, %c0_i32_0 : i32, i32
  }
  func.func @transform_2(%arg0: i32) -> (i32, i32) {
    %c0_i32 = arith.constant 0 : i32
    %c0_i32_0 = arith.constant 0 : i32
    %c0_i32_1 = arith.constant 0 : i32
    return %c0_i32, %c0_i32_0 : i32, i32
  }
  func.func @transform_3(%arg0: i32) -> (i32, i32) {
    %c0_i32 = arith.constant 0 : i32
    %c0_i32_0 = arith.constant 0 : i32
    %c0_i32_1 = arith.constant 0 : i32
    return %c0_i32, %c0_i32_0 : i32, i32
  }
  func.func @transform_4(%arg0: i32) -> (i32, i32) {
    %c0_i32 = arith.constant 0 : i32
    %c0_i32_0 = arith.constant 0 : i32
    %c0_i32_1 = arith.constant 0 : i32
    return %c0_i32, %c0_i32_0 : i32, i32
  }
  func.func @transform_5(%arg0: i32) -> (i32, i32) {
    %c0_i32 = arith.constant 0 : i32
    %c0_i32_0 = arith.constant 0 : i32
    %c0_i32_1 = arith.constant 0 : i32
    return %c0_i32, %c0_i32_0 : i32, i32
  }
  func.func @transform_6(%arg0: i32) -> (i32, i32) {
    %c0_i32 = arith.constant 0 : i32
    %c0_i32_0 = arith.constant 0 : i32
    %c0_i32_1 = arith.constant 0 : i32
    return %c0_i32, %c0_i32_0 : i32, i32
  }
  func.func @transform_7(%arg0: i32) -> (i32, i32) {
    %c0_i32 = arith.constant 0 : i32
    %c0_i32_0 = arith.constant 0 : i32
    return %arg0, %c0_i32 : i32, i32
  }
}

</mosaic_0001>

<bundles_post_ra>
// kernel: tpu_custom_call.1
= control target key start
LH: loop header
LB: loop body
LE: loop exit
PB: predicated region body
PF: predicated region fallthrough
CT: control target
= control target key end

     0   :  { %12 = vsyncpa [#allocation3], 0  ;;  %s2047_s0 = inlined_call_operand.hbm [shape: f32[8,32], index: 0, kind: input, shape index: {}]   ;;  %s2048_s1 = inlined_call_operand.hbm [shape: bf16[32,512], index: 1, kind: input, shape index: {}]   ;;  %s2049_s2 = inlined_call_operand.vmem [shape: f32[1,512], index: 2, kind: input, shape index: {}]   ;;  %s2050_s3 = inlined_call_operand.hbm [shape: bf16[512,384], index: 3, kind: input, shape index: {}]   ;;  %s2051_s4 = inlined_call_operand.vmem [shape: f32[1,384], index: 4, kind: input, shape index: {}]   ;;  %s2052_s5 = inlined_call_operand.hbm [shape: bf16[384,128], index: 5, kind: input, shape index: {}]   ;;  %s2053_s6 = inlined_call_operand.vmem [shape: f32[1,128], index: 6, kind: input, shape index: {}]   ;;  %s2054_s7 = inlined_call_operand.hbm [shape: f32[8,128], index: 7, kind: output, shape index: {}]  }
   0x1   :  { %13 = vsyncpa [#allocation6], 0 }
   0x2   :  { %14 = vsyncpa [#allocation9], 0 }
   0x3   :  { %15 = vsyncpa [#allocation4], 0  ;;  %s1900_s24 = smov [#allocation5]   ;;  %s1782_s28 = scalar_lea.hbm %s2048_s1, 1024 }
   0x4   :  { %s31_s25 = sshll.u32 %s1900_s24, 4  ;;  %p1783_p0 = scmp.ne.s32.totalorder %s2048_s1, %s1782_s28  ;;  %s32_s25 = int_to_ptr.vmem [resolvable:$true] %s31_s25 }
   0x5   :  { %p1786_p1 = scmp.lt.u32.totalorder %s1782_s28, %s2048_s1 }
   0x7   :  { %p1788_p2 = pnand %p1786_p1, %p1783_p0 }
   0x9   :  { %1791 = shalt.err (!%p1788_p2)
}
   0xa   :  { %s1792_s10 = scalar_lea.vmem %s32_s25, 1024  ;;  %p1797_p4 = scmp.lt.s32.totalorder %s32_s25, %s32_s25 }
   0xb   :  { %p1793_p3 = scmp.ne.s32.totalorder %s32_s25, %s1792_s10  ;;  %p1798_p5 = scmp.lt.s32.totalorder %s1792_s10, %s1792_s10 }
   0xd   :  { %p1799_p6 = por %p1798_p5, %p1797_p4 }
   0xf   :  { %p1800_p7 = pnand %p1799_p6, %p1793_p3 }
  0x11   :  { %1803 = shalt.err (!%p1800_p7)
}
  0x12   :  { %s1901_s11 = smov 256   ;;  %s1902_s12 = smov 16  }
  0x13   :  { %37 = dma.hbm_to_vmem [thread:$0]  %s2048_s1, 1024, %s32_s25, [#allocation6], %s1901_s11, %s1901_s11, %s1902_s12  }
  0x14   :  { %s1903_s15 = smov [#allocation2]   ;;  %s1904_s17 = smov [#allocation7]  }
  0x15   :  { %s22_s16 = sshll.u32 %s1903_s15, 4  ;;  %s45_s18 = sshll.u32 %s1904_s17, 4  ;;  %s23_s16 = int_to_ptr.vmem [resolvable:$true] %s22_s16  ;;  %s46_s18 = int_to_ptr.vmem [resolvable:$true] %s45_s18 }
  0x16   :  { %s1804_s21 = scalar_lea.hbm %s2047_s0, 128 }
  0x17   :  { %p1805_p8 = scmp.ne.s32.totalorder %s2047_s0, %s1804_s21  ;;  %p1808_p9 = scmp.lt.u32.totalorder %s1804_s21, %s2047_s0 }
  0x19   :  { %p1810_p10 = pnand %p1808_p9, %p1805_p8 }
  0x1b   :  { %1813 = shalt.err (!%p1810_p10)
}
  0x1c   :  { %s1814_s1 = scalar_lea.vmem %s23_s16, 128  ;;  %p1819_p12 = scmp.lt.s32.totalorder %s23_s16, %s23_s16 }
  0x1d   :  { %p1815_p11 = scmp.ne.s32.totalorder %s23_s16, %s1814_s1  ;;  %p1820_p13 = scmp.lt.s32.totalorder %s1814_s1, %s1814_s1 }
  0x1f   :  { %p1821_p0 = por %p1820_p13, %p1819_p12 }
  0x21   :  { %p1822_p1 = pnand %p1821_p0, %p1815_p11 }
  0x23   :  { %1825 = shalt.err (!%p1822_p1)
}
  0x24   :  { %25 = dma.hbm_to_vmem [thread:$0]  %s2047_s0, 128, %s23_s16, [#allocation3]  }
  0x25   :  { %s1826_s30 = scalar_lea.hbm %s2050_s3, 12288 }
  0x26   :  { %p1827_p2 = scmp.ne.s32.totalorder %s2050_s3, %s1826_s30  ;;  %p1830_p3 = scmp.lt.u32.totalorder %s1826_s30, %s2050_s3 }
  0x28   :  { %p1832_p4 = pnand %p1830_p3, %p1827_p2 }
  0x2a   :  { %1835 = shalt.err (!%p1832_p4)
}
  0x2b   :  { %s1836_s12 = scalar_lea.vmem %s46_s18, 12288  ;;  %p1841_p6 = scmp.lt.s32.totalorder %s46_s18, %s46_s18 }
  0x2c   :  { %p1837_p5 = scmp.ne.s32.totalorder %s46_s18, %s1836_s12  ;;  %p1842_p7 = scmp.lt.s32.totalorder %s1836_s12, %s1836_s12 }
  0x2e   :  { %p1843_p8 = por %p1842_p7, %p1841_p6 }
  0x30   :  { %p1844_p9 = pnand %p1843_p8, %p1837_p5 }
  0x32   :  { %1847 = shalt.err (!%p1844_p9)
}
  0x33   :  { %s1905_s0 = smov 192   ;;  %s1906_s13 = smov 12  }
  0x34   :  { %51 = dma.hbm_to_vmem [thread:$0]  %s2050_s3, 12288, %s46_s18, [#allocation6], %s1905_s0, %s1905_s0, %s1906_s13  }
  0x35   :  { %s1907_s16 = smov [#allocation8]   ;;  %s1848_s21 = scalar_lea.hbm %s2052_s5, 3072 }
  0x36   :  { %s59_s17 = sshll.u32 %s1907_s16, 4  ;;  %p1849_p10 = scmp.ne.s32.totalorder %s2052_s5, %s1848_s21  ;;  %s60_s17 = int_to_ptr.vmem [resolvable:$true] %s59_s17 }
  0x37   :  { %p1852_p11 = scmp.lt.u32.totalorder %s1848_s21, %s2052_s5 }
  0x39   :  { %p1854_p12 = pnand %p1852_p11, %p1849_p10 }
  0x3b   :  { %1857 = shalt.err (!%p1854_p12)
}
  0x3c   :  { %s1858_s1 = scalar_lea.vmem %s60_s17, 3072  ;;  %p1863_p0 = scmp.lt.s32.totalorder %s60_s17, %s60_s17 }
  0x3d   :  { %p1859_p13 = scmp.ne.s32.totalorder %s60_s17, %s1858_s1  ;;  %p1864_p1 = scmp.lt.s32.totalorder %s1858_s1, %s1858_s1 }
  0x3f   :  { %p1865_p2 = por %p1864_p1, %p1863_p0 }
  0x41   :  { %p1866_p3 = pnand %p1865_p2, %p1859_p13 }
  0x43   :  { %1869 = shalt.err (!%p1866_p3)
}
  0x44   :  { %s1908_s3 = smov 64   ;;  %s1909_s18 = smov 4  }
  0x45   :  { %65 = dma.hbm_to_vmem [thread:$0]  %s2052_s5, 3072, %s60_s17, [#allocation9], %s1908_s3, %s1908_s3, %s1909_s18  }
  0x46   :  { %1892 = dma.done.wait [#allocation3], 128  }
  0x47   :  { %1893 = vsyncadd [#allocation3], 4294967168 }
  0x48   :  { %1894 = dma.done.wait [#allocation6], 13312  }
  0x49   :  { %1895 = vsyncadd [#allocation6], 4294953984 }
  0x4a   :  { %1896 = dma.done.wait [#allocation9], 3072  }
  0x4b   :  { %1897 = vsyncadd [#allocation9], 4294964224  ;;  %v1910_v0 = vmov 0   ;;  %v1616_v1 = vld [vmem:[#allocation5 + $0x4] ss:$16 sps:$4 sm:$0xff]   ;;  %v81_v5 = vld [vmem:[#allocation2] sm:$0xff]  ;;  %v93_v61 = vlaneseq }
  0x4c   :  { %189 = vmatprep.mubr.bf16.mxu0 %v1910_v0  ;;  %230 = vmatprep.mubr.bf16.mxu1 %v1910_v0  ;;  %v1618_v2 = vld [vmem:[#allocation5] ss:$16 sps:$4 sm:$0xff]   ;;  %v1619_v3 = vld [vmem:[#allocation5 + $0x24] ss:$16 sps:$4 sm:$0xff]   ;;  %v1622_v6 = vld [vmem:[#allocation5 + $0xc] ss:$16 sps:$4 sm:$0xff]   ;;  %v82_v9 = vpack.c.bf16 %v81_v5, %v81_v5 }
  0x4d   :  { %157 = vmatprep.subr.bf16.mxu0 %v1616_v1  ;;  %v1621_v4 = vld [vmem:[#allocation5 + $0x20] ss:$16 sps:$4 sm:$0xff]   ;;  %v1624_v7 = vld [vmem:[#allocation5 + $0x8] ss:$16 sps:$4 sm:$0xff]   ;;  %198 = vmatprep.subr.bf16.mxu1 %v1622_v6  ;;  %v1625_v8 = vld [vmem:[#allocation5 + $0x2c] ss:$16 sps:$4 sm:$0xff]  }
  0x4e   :  { %158 = vmatpush1.bf16.msra.mxu0 %v1618_v2  ;;  %199 = vmatpush1.bf16.msra.mxu1 %v1624_v7  ;;  %v1627_v10 = vld [vmem:[#allocation5 + $0x28] ss:$16 sps:$4 sm:$0xff]   ;;  %v1630_v11 = vld [vmem:[#allocation7 + $0x4] ss:$12 sps:$4 sm:$0xff]   ;;  %vm153_vm0 = vcmask 261120   ;;  %v2002_v62 = vshrl.u32 %v93_v61, 7 }
  0x4f   :  { %159 = vmatprep.subr.bf16.mxu0 %v1619_v3  ;;  %200 = vmatprep.subr.bf16.mxu1 %v1625_v8  ;;  %v1628_v12 = vld [vmem:[#allocation7] ss:$12 sps:$4 sm:$0xff]   ;;  %v1633_v13 = vld [vmem:[#allocation7 + $0x1c] ss:$12 sps:$4 sm:$0xff]   ;;  %v1631_v14 = vld [vmem:[#allocation7 + $0x18] ss:$12 sps:$4 sm:$0xff]  }
  0x50   :  { %v1636_v15 = vld [vmem:[#allocation7 + $0x34] ss:$12 sps:$4 sm:$0xff]   ;;  %v1634_v16 = vld [vmem:[#allocation7 + $0x30] ss:$12 sps:$4 sm:$0xff]   ;;  %v1639_v17 = vld [vmem:[#allocation7 + $0x4c] ss:$12 sps:$4 sm:$0xff]  }
  0x51   :  { %v1637_v18 = vld [vmem:[#allocation7 + $0x48] ss:$12 sps:$4 sm:$0xff]   ;;  %v1642_v21 = vld [vmem:[#allocation7 + $0x64] ss:$12 sps:$4 sm:$0xff]   ;;  %v1660_v22 = vld [vmem:[#allocation7 + $0xe0] ss:$12 sps:$4 sm:$0xff]  }
  0x52   :  { %160 = vmatpush1.bf16.msra.mxu0 %v1621_v4  ;;  %201 = vmatpush1.bf16.msra.mxu1 %v1627_v10  ;;  %v1655_v19 = vld [vmem:[#allocation7 + $0xc8] ss:$12 sps:$4 sm:$0xff]   ;;  %v1661_v23 = vld [vmem:[#allocation7 + $0x20] ss:$12 sps:$4 sm:$0xff]   ;;  %v1665_v26 = vld [vmem:[#allocation7 + $0xf8] ss:$12 sps:$4 sm:$0xff]  }
  0x53   :  { %904 = vmatprep.subr.bf16.mxu0 %v1630_v11  ;;  %v1656_v20 = vld [vmem:[#allocation7 + $0x8] ss:$12 sps:$4 sm:$0xff]   ;;  %1501 = vmatprep.subr.bf16.mxu1 %v1655_v19  ;;  %v1640_v24 = vld [vmem:[#allocation7 + $0x60] ss:$12 sps:$4 sm:$0xff]   ;;  %v1666_v27 = vld [vmem:[#allocation7 + $0x38] ss:$12 sps:$4 sm:$0xff]  }
  0x54   :  { %v1645_v25 = vld [vmem:[#allocation7 + $0x7c] ss:$12 sps:$4 sm:$0xff]   ;;  %v1643_v28 = vld [vmem:[#allocation7 + $0x78] ss:$12 sps:$4 sm:$0xff]   ;;  %v1648_v29 = vld [vmem:[#allocation7 + $0x94] ss:$12 sps:$4 sm:$0xff]  }
  0x55   :  { %1378 = vmatmul.mubr.msk.bf16.vlgmr.msra.gmra.mrb[0].mxu0 %vm153_vm0, %v82_v9  ;;  %1379 = vmatmul.mubr.msk.bf16.vlgmr.msra.gmra.mrb[0].mxu1 %vm153_vm0, %v82_v9  ;;  %v1670_v30 = vld [vmem:[#allocation7 + $0x110] ss:$12 sps:$4 sm:$0xff]   ;;  %v1675_v33 = vld [vmem:[#allocation7 + $0x128] ss:$12 sps:$4 sm:$0xff]   ;;  %v1651_v34 = vld [vmem:[#allocation7 + $0xac] ss:$12 sps:$4 sm:$0xff]  }
  0x56   :  { %905 = vmatpush1.bf16.msra.mxu0 %v1628_v12  ;;  %1502 = vmatpush3.bf16.msra.mxu1 %v1656_v20  ;;  %v1671_v31 = vld [vmem:[#allocation7 + $0x50] ss:$12 sps:$4 sm:$0xff]   ;;  %v1676_v35 = vld [vmem:[#allocation7 + $0x68] ss:$12 sps:$4 sm:$0xff]   ;;  %v1680_v37 = vld [vmem:[#allocation7 + $0x140] ss:$12 sps:$4 sm:$0xff]  }
  0x57   :  { %906 = vmatprep.subr.bf16.mxu0 %v1633_v13  ;;  %1503 = vmatprep.subr.bf16.mxu1 %v1660_v22  ;;  %v1646_v32 = vld [vmem:[#allocation7 + $0x90] ss:$12 sps:$4 sm:$0xff]   ;;  %v1649_v36 = vld [vmem:[#allocation7 + $0xa8] ss:$12 sps:$4 sm:$0xff]   ;;  %v1681_v39 = vld [vmem:[#allocation7 + $0x80] ss:$12 sps:$4 sm:$0xff]  }
  0x58   :  { %v1654_v38 = vld [vmem:[#allocation7 + $0xc4] ss:$12 sps:$4 sm:$0xff]   ;;  %v1652_v40 = vld [vmem:[#allocation7 + $0xc0] ss:$12 sps:$4 sm:$0xff]   ;;  %v1659_v41 = vld [vmem:[#allocation7 + $0xdc] ss:$12 sps:$4 sm:$0xff]  }
  0x59   :  { %v1657_v42 = vld [vmem:[#allocation7 + $0xd8] ss:$12 sps:$4 sm:$0xff]   ;;  %v1664_v43 = vld [vmem:[#allocation7 + $0xf4] ss:$12 sps:$4 sm:$0xff]   ;;  %v1662_v44 = vld [vmem:[#allocation7 + $0xf0] ss:$12 sps:$4 sm:$0xff]  }
  0x5a   :  { %907 = vmatpush1.bf16.msra.mxu0 %v1631_v14  ;;  %1504 = vmatpush3.bf16.msra.mxu1 %v1661_v23  ;;  %v1669_v45 = vld [vmem:[#allocation7 + $0x10c] ss:$12 sps:$4 sm:$0xff]   ;;  %v1667_v46 = vld [vmem:[#allocation7 + $0x108] ss:$12 sps:$4 sm:$0xff]   ;;  %v1674_v47 = vld [vmem:[#allocation7 + $0x124] ss:$12 sps:$4 sm:$0xff]  }
  0x5b   :  { %908 = vmatprep.subr.bf16.mxu0 %v1636_v15  ;;  %1505 = vmatprep.subr.bf16.mxu1 %v1665_v26  ;;  %v1672_v48 = vld [vmem:[#allocation7 + $0x120] ss:$12 sps:$4 sm:$0xff]   ;;  %v1679_v49 = vld [vmem:[#allocation7 + $0x13c] ss:$12 sps:$4 sm:$0xff]   ;;  %v1677_v50 = vld [vmem:[#allocation7 + $0x138] ss:$12 sps:$4 sm:$0xff]  }
  0x5c   :  { %v1684_v51 = vld [vmem:[#allocation7 + $0x154] ss:$12 sps:$4 sm:$0xff]   ;;  %v1685_v52 = vld [vmem:[#allocation7 + $0x158] ss:$12 sps:$4 sm:$0xff]   ;;  %v1682_v53 = vld [vmem:[#allocation7 + $0x150] ss:$12 sps:$4 sm:$0xff]  }
  0x5d   :  { %v1686_v54 = vld [vmem:[#allocation7 + $0x98] ss:$12 sps:$4 sm:$0xff]   ;;  %v1690_v56 = vld [vmem:[#allocation7 + $0x170] ss:$12 sps:$4 sm:$0xff]   ;;  %v1687_v57 = vld [vmem:[#allocation7 + $0x168] ss:$12 sps:$4 sm:$0xff]  }
  0x5e   :  { %909 = vmatpush1.bf16.msra.mxu0 %v1634_v16  ;;  %1506 = vmatpush3.bf16.msra.mxu1 %v1666_v27  ;;  %v1689_v55 = vld [vmem:[#allocation7 + $0x16c] ss:$12 sps:$4 sm:$0xff]   ;;  %v1691_v58 = vld [vmem:[#allocation7 + $0xb0] ss:$12 sps:$4 sm:$0xff]   ;;  %v1695_v60 = vld [vmem:[#allocation7 + $0x248] ss:$12 sps:$4 sm:$0xff]  }
  0x5f   :  { %910 = vmatprep.subr.bf16.mxu0 %v1639_v17  ;;  %1507 = vmatprep.subr.bf16.mxu1 %v1670_v30  ;;  %v1694_v59 = vld [vmem:[#allocation7 + $0x184] ss:$12 sps:$4 sm:$0xff]   ;;  %v95_v63 = vsub.s32 0, %v2002_v62  ;;  %v2008_v0 = vld [vmem:[%s2049_s2] sm:$0xf]  ;;  %v99_v1 = vsub.s32 1, %v2002_v62 }
  0x60   :  { %v107_v3 = vsub.s32 3, %v2002_v62  ;;  %v1692_v19 = vld [vmem:[#allocation7 + $0x180] ss:$12 sps:$4 sm:$0xff]   ;;  %v1696_v20 = vld [vmem:[#allocation7 + $0x188] ss:$12 sps:$4 sm:$0xff]   ;;  %vm1912_vm1 = vmmov 0  }
  0x61   :  { %v96_v2 = vrot.slane %v2008_v0, %v95_v63  ;;  %v100_v4 = vrot.slane %v2008_v0, %v99_v1  ;;  %v1699_v23 = vld [vmem:[#allocation7 + $0x19c] ss:$12 sps:$4 sm:$0xff]   ;;  %v1697_v27 = vld [vmem:[#allocation7 + $0x198] ss:$12 sps:$4 sm:$0xff]   ;;  %s1913_s8 = smov [#allocation10]  }
  0x62   :  { %911 = vmatpush1.bf16.msra.mxu0 %v1637_v18  ;;  %1508 = vmatpush3.bf16.msra.mxu1 %v1671_v31  ;;  %v108_v8 = vrot.slane %v2008_v0, %v107_v3  ;;  %v1705_v30 = vld [vmem:[#allocation7 + $0x278] ss:$12 sps:$4 sm:$0xff]   ;;  %v1702_v31 = vld [vmem:[#allocation7 + $0x1b0] ss:$12 sps:$4 sm:$0xff]   ;;  %s1359_s9 = sshll.u32 %s1913_s8, 4  ;;  %s1360_s9 = int_to_ptr.vmem [resolvable:$true] %s1359_s9 }
  0x63   :  { %912 = vmatprep.subr.bf16.mxu0 %v1642_v21  ;;  %1509 = vmatprep.subr.bf16.mxu1 %v1675_v33  ;;  %v1709_v33 = vld [vmem:[#allocation7 + $0x1cc] ss:$12 sps:$4 sm:$0xff]   ;;  %s1870_s10 = scalar_lea.vmem %s1360_s9, 128  ;;  %p1875_p5 = scmp.lt.s32.totalorder %s1360_s9, %s1360_s9 }
  0x64   :  { %v1735_v61 = vld [vmem:[#allocation7 + $0x258] ss:$12 sps:$4 sm:$0xff]   ;;  %p1871_p4 = scmp.ne.s32.totalorder %s1360_s9, %s1870_s10  ;;  %p1876_p6 = scmp.lt.s32.totalorder %s1870_s10, %s1870_s10 }
  0x65   :  { %v1743_v3 = vld [vmem:[#allocation7 + $0x28c] ss:$12 sps:$4 sm:$0xff]  }
  0x66   :  { %913 = vmatpush1.bf16.msra.mxu0 %v1640_v24  ;;  %1510 = vmatpush3.bf16.msra.mxu1 %v1676_v35  ;;  %v1700_v24 = vld [vmem:[#allocation7 + $0x260] ss:$12 sps:$4 sm:$0xff]   ;;  %v1707_v35 = vld [vmem:[#allocation7 + $0x1c8] ss:$12 sps:$4 sm:$0xff]   ;;  %p1877_p7 = por %p1876_p6, %p1875_p5 }
  0x67   :  { %914 = vmatprep.subr.bf16.mxu0 %v1645_v25  ;;  %1511 = vmatprep.subr.bf16.mxu1 %v1680_v37  ;;  %v1714_v37 = vld [vmem:[#allocation7 + $0x1e4] ss:$12 sps:$4 sm:$0xff]  }
  0x68   :  { %p1878_p8 = pnand %p1877_p7, %p1871_p4 }
  0x6a   :  { %915 = vmatpush1.bf16.msra.mxu0 %v1643_v28  ;;  %1512 = vmatpush3.bf16.msra.mxu1 %v1681_v39  ;;  %v1701_v28 = vld [vmem:[#allocation7 + $0x1a0] ss:$12 sps:$4 sm:$0xff]   ;;  %v103_v39 = vsub.s32 2, %v2002_v62  ;;  %v1774_v62 = vld [vmem:[#allocation8 + $0x90] sm:$0xff]  }
  0x6b   :  { %916 = vmatprep.subr.bf16.mxu0 %v1648_v29  ;;  %1513 = vmatprep.subr.bf16.mxu1 %v1685_v52  ;;  %v1704_v29 = vld [vmem:[#allocation7 + $0x1b4] ss:$12 sps:$4 sm:$0xff]   ;;  %v1729_v52 = vld [vmem:[#allocation7 + $0x22c] ss:$12 sps:$4 sm:$0xff]  }
  0x6e   :  { %917 = vmatpush1.bf16.msra.mxu0 %v1646_v32  ;;  %1514 = vmatpush3.bf16.msra.mxu1 %v1686_v54  ;;  %v1706_v32 = vld [vmem:[#allocation7 + $0x1b8] ss:$12 sps:$4 sm:$0xff]  }
  0x6f   :  { %918 = vmatprep.subr.bf16.mxu0 %v1651_v34  ;;  %1515 = vmatprep.subr.bf16.mxu1 %v1690_v56  ;;  %v1710_v34 = vld [vmem:[#allocation7 + $0x290] ss:$12 sps:$4 sm:$0xff]  }
  0x70   :  { %v1731_v56 = vld [vmem:[#allocation7 + $0x230] ss:$12 sps:$4 sm:$0xff]  }
  0x72   :  { %919 = vmatpush1.bf16.msra.mxu0 %v1649_v36  ;;  %1516 = vmatpush3.bf16.msra.mxu1 %v1691_v58  ;;  %v1711_v36 = vld [vmem:[#allocation7 + $0x1d0] ss:$12 sps:$4 sm:$0xff]  }
  0x73   :  { %920 = vmatprep.subr.bf16.mxu0 %v1654_v38  ;;  %1523 = vmatprep.subr.bf16.mxu1 %v1695_v60  ;;  %v1715_v38 = vld [vmem:[#allocation7 + $0x2a8] ss:$12 sps:$4 sm:$0xff]  }
  0x74   :  { %v1737_v60 = vld [vmem:[#allocation7 + $0x25c] ss:$12 sps:$4 sm:$0xff]  }
  0x76   :  { %921 = vmatpush1.bf16.msra.mxu0 %v1652_v40  ;;  %v1712_v40 = vld [vmem:[#allocation7 + $0x1e0] ss:$12 sps:$4 sm:$0xff]  }
  0x77   :  { %922 = vmatprep.subr.bf16.mxu0 %v1659_v41  ;;  %v1716_v41 = vld [vmem:[#allocation7 + $0x1e8] ss:$12 sps:$4 sm:$0xff]  }
  0x7a   :  { %923 = vmatpush1.bf16.msra.mxu0 %v1657_v42  ;;  %v1719_v42 = vld [vmem:[#allocation7 + $0x1fc] ss:$12 sps:$4 sm:$0xff]  }
  0x7b   :  { %924 = vmatprep.subr.bf16.mxu0 %v1664_v43  ;;  %v1720_v43 = vld [vmem:[#allocation7 + $0x2c0] ss:$12 sps:$4 sm:$0xff]  }
  0x7e   :  { %925 = vmatpush1.bf16.msra.mxu0 %v1662_v44  ;;  %v104_v44 = vrot.slane %v2008_v0, %v103_v39  ;;  %v1740_v0 = vld [vmem:[#allocation7 + $0x274] ss:$12 sps:$4 sm:$0xff]  }
  0x7f   :  { %926 = vmatprep.subr.bf16.mxu0 %v1669_v45  ;;  %v1717_v45 = vld [vmem:[#allocation7 + $0x1f8] ss:$12 sps:$4 sm:$0xff]  }
  0x82   :  { %927 = vmatpush1.bf16.msra.mxu0 %v1667_v46  ;;  %v1721_v46 = vld [vmem:[#allocation7 + $0x200] ss:$12 sps:$4 sm:$0xff]  }
  0x83   :  { %928 = vmatprep.subr.bf16.mxu0 %v1674_v47  ;;  %v1724_v47 = vld [vmem:[#allocation7 + $0x214] ss:$12 sps:$4 sm:$0xff]  }
  0x86   :  { %929 = vmatpush1.bf16.msra.mxu0 %v1672_v48  ;;  %v1725_v48 = vld [vmem:[#allocation7 + $0x2d8] ss:$12 sps:$4 sm:$0xff]  }
  0x87   :  { %930 = vmatprep.subr.bf16.mxu0 %v1679_v49 }
  0x8a   :  { %931 = vmatpush1.bf16.msra.mxu0 %v1677_v50  ;;  %v1722_v50 = vld [vmem:[#allocation7 + $0x210] ss:$12 sps:$4 sm:$0xff]  }
  0x8b   :  { %932 = vmatprep.subr.bf16.mxu0 %v1684_v51  ;;  %v1726_v51 = vld [vmem:[#allocation7 + $0x218] ss:$12 sps:$4 sm:$0xff]  }
  0x8e   :  { %933 = vmatpush1.bf16.msra.mxu0 %v1682_v53  ;;  %v1730_v53 = vld [vmem:[#allocation7 + $0x2f0] ss:$12 sps:$4 sm:$0xff]  }
  0x8f   :  { %934 = vmatprep.subr.bf16.mxu0 %v1689_v55  ;;  %v1727_v55 = vld [vmem:[#allocation7 + $0x228] ss:$12 sps:$4 sm:$0xff]  }
  0x92   :  { %935 = vmatpush1.bf16.msra.mxu0 %v1687_v57  ;;  %v1734_v57 = vld [vmem:[#allocation7 + $0x244] ss:$12 sps:$4 sm:$0xff]  }
  0x93   :  { %945 = vmatprep.subr.bf16.mxu0 %v1694_v59  ;;  %v1732_v59 = vld [vmem:[#allocation7 + $0x240] ss:$12 sps:$4 sm:$0xff]  }
 0x128   :  { %v191_v5 = vpop.f32.mrb[0].mxu0  ;;  %v232_v13 = vpop.f32.mrb[0].mxu1 }
 0x129   :  { %v192_v6 = vadd.f32 %v191_v5, %v96_v2  ;;  %v193_v7 = vpop.f32.mrb[1].mxu0  ;;  %v234_v15 = vpop.f32.mrb[1].mxu1  ;;  %v233_v49 = vadd.f32 %v232_v13, %v104_v44  ;;  %v1738_v2 = vld [vmem:[#allocation7 + $0x270] ss:$12 sps:$4 sm:$0xff]   ;;  %v1756_v13 = vld [vmem:[#allocation8 + $0x40] sm:$0xff]  }
 0x12a   :  { %v194_v9 = vadd.f32 %v193_v7, %v100_v4  ;;  %v195_v10 = vpop.f32.mrb[2].mxu0  ;;  %v235_v16 = vadd.f32 %v234_v15, %v108_v8  ;;  %v236_v17 = vpop.f32.mrb[2].mxu1  ;;  %v1741_v4 = vld [vmem:[#allocation7 + $0x288] ss:$12 sps:$4 sm:$0xff]   ;;  %v1746_v5 = vld [vmem:[#allocation7 + $0x2a4] ss:$12 sps:$4 sm:$0xff]  }
 0x12b   :  { %v239_v11 = vmax.f32 %v192_v6, 0.0  ;;  %v196_v12 = vpop.f32.mrb[3].mxu0  ;;  %v237_v21 = vpop.f32.mrb[3].mxu1  ;;  %v241_v54 = vmax.f32 %v233_v49, 0.0  ;;  %v1744_v6 = vld [vmem:[#allocation7 + $0x2a0] ss:$12 sps:$4 sm:$0xff]  }
 0x12c   :  { %v240_v14 = vmax.f32 %v194_v9, 0.0  ;;  %v242_v25 = vmax.f32 %v235_v16, 0.0  ;;  %v1749_v7 = vld [vmem:[#allocation7 + $0x2bc] ss:$12 sps:$4 sm:$0xff]   ;;  %v1747_v8 = vld [vmem:[#allocation7 + $0x2b8] ss:$12 sps:$4 sm:$0xff]  }
 0x12d   :  { %v243_v22 = vpack.c.bf16 %v239_v11, %v239_v11  ;;  %v245_v58 = vpack.c.bf16 %v241_v54, %v241_v54  ;;  %v1752_v9 = vld [vmem:[#allocation7 + $0x2d4] ss:$12 sps:$4 sm:$0xff]   ;;  %v1750_v10 = vld [vmem:[#allocation7 + $0x2d0] ss:$12 sps:$4 sm:$0xff]   ;;  %v1755_v11 = vld [vmem:[#allocation7 + $0x2ec] ss:$12 sps:$4 sm:$0xff]  }
 0x12e   :  { %v244_v18 = vpack.c.bf16 %v240_v14, %v240_v14  ;;  %v246_v26 = vpack.c.bf16 %v242_v25, %v242_v25  ;;  %v1753_v12 = vld [vmem:[#allocation7 + $0x2e8] ss:$12 sps:$4 sm:$0xff]   ;;  %v1757_v14 = vld [vmem:[#allocation8] sm:$0xff]  }
 0x12f   :  { %v1758_v15 = vld [vmem:[#allocation8 + $0x48] sm:$0xff]   ;;  %v1760_v17 = vld [vmem:[#allocation8 + $0x50] sm:$0xff]   ;;  %v1764_v21 = vld [vmem:[#allocation8 + $0x60] sm:$0xff]  }
 0x130   :  { %936 = vmatprep.mubr.bf16.mxu0 %v244_v18  ;;  %1018 = vmatprep.mubr.bf16.mxu1 %v244_v18  ;;  %v1759_v16 = vld [vmem:[#allocation8 + $0x8] sm:$0xff]   ;;  %v1761_v18 = vld [vmem:[#allocation8 + $0x10] sm:$0xff]  }
 0x131   :  { %937 = vmatmul.mubr.bf16.vlgmr.msra.gmra.mrb[4].mxu0 %v243_v22  ;;  %1019 = vmatmul.mubr.bf16.vlgmr.msra.gmra.mrb[4].mxu1 %v243_v22  ;;  %v1765_v22 = vld [vmem:[#allocation8 + $0x20] sm:$0xff]   ;;  %v1768_v25 = vld [vmem:[#allocation8 + $0x70] sm:$0xff]  }
 0x132   :  { %946 = vmatpush1.bf16.msra.mxu0 %v1692_v19  ;;  %1524 = vmatpush3.bf16.msra.mxu1 %v1696_v20  ;;  %v1762_v19 = vld [vmem:[#allocation8 + $0x58] sm:$0xff]  }
 0x133   :  { %947 = vmatprep.subr.bf16.mxu0 %v1699_v23  ;;  %1525 = vmatprep.subr.bf16.mxu1 %v1700_v24  ;;  %v1763_v20 = vld [vmem:[#allocation8 + $0x18] sm:$0xff]   ;;  %v1766_v23 = vld [vmem:[#allocation8 + $0x68] sm:$0xff]  }
 0x134   :  { %1058 = vmatprep.mubr.bf16.mxu1 %v246_v26  ;;  %977 = vmatprep.mubr.bf16.mxu0 %v246_v26  ;;  %v1767_v24 = vld [vmem:[#allocation8 + $0x28] sm:$0xff]   ;;  %v1769_v26 = vld [vmem:[#allocation8 + $0x30] sm:$0xff]  }
 0x136   :  { %948 = vmatpush1.bf16.msra.mxu0 %v1697_v27  ;;  %1526 = vmatpush3.bf16.msra.mxu1 %v1701_v28  ;;  %v1770_v27 = vld [vmem:[#allocation8 + $0x78] sm:$0xff]  }
 0x137   :  { %949 = vmatprep.subr.bf16.mxu0 %v1704_v29  ;;  %1527 = vmatprep.subr.bf16.mxu1 %v1705_v30  ;;  %v1771_v28 = vld [vmem:[#allocation8 + $0x38] sm:$0xff]   ;;  %v1911_v29 = vmov 0.0  }
 0x13a   :  { %950 = vmatpush1.bf16.msra.mxu0 %v1702_v31  ;;  %1528 = vmatpush3.bf16.msra.mxu1 %v1706_v32 }
 0x13b   :  { %951 = vmatprep.subr.bf16.mxu0 %v1709_v33  ;;  %1529 = vmatprep.subr.bf16.mxu1 %v1710_v34 }
 0x13e   :  { %952 = vmatpush1.bf16.msra.mxu0 %v1707_v35  ;;  %1530 = vmatpush3.bf16.msra.mxu1 %v1711_v36  ;;  %v375_v35 = vld [vmem:[%s2051_s4] sm:$0x7] }
 0x13f   :  { %953 = vmatprep.subr.bf16.mxu0 %v1714_v37  ;;  %1531 = vmatprep.subr.bf16.mxu1 %v1715_v38  ;;  %v388_v36 = vrot.slane %v375_v35, %v103_v39 }
 0x142   :  { %954 = vmatpush1.bf16.msra.mxu0 %v1712_v40  ;;  %1532 = vmatpush3.bf16.msra.mxu1 %v1716_v41 }
 0x143   :  { %955 = vmatprep.subr.bf16.mxu0 %v1719_v42  ;;  %1533 = vmatprep.subr.bf16.mxu1 %v1720_v43 }
 0x146   :  { %956 = vmatpush1.bf16.msra.mxu0 %v1717_v45  ;;  %1534 = vmatpush3.bf16.msra.mxu1 %v1721_v46  ;;  %v380_v45 = vrot.slane %v375_v35, %v95_v63  ;;  %v384_v46 = vrot.slane %v375_v35, %v99_v1  ;;  %v1775_v63 = vld [vmem:[#allocation8 + $0x98] sm:$0xff]   ;;  %v1776_v1 = vld [vmem:[#allocation8 + $0xa0] sm:$0xff]  }
 0x147   :  { %957 = vmatprep.subr.bf16.mxu0 %v1724_v47  ;;  %1535 = vmatprep.subr.bf16.mxu1 %v1725_v48 }
 0x14a   :  { %958 = vmatpush1.bf16.msra.mxu0 %v1722_v50  ;;  %1536 = vmatpush3.bf16.msra.mxu1 %v1726_v51 }
 0x14b   :  { %959 = vmatprep.subr.bf16.mxu0 %v1729_v52  ;;  %1537 = vmatprep.subr.bf16.mxu1 %v1730_v53 }
 0x14e   :  { %960 = vmatpush1.bf16.msra.mxu0 %v1727_v55  ;;  %1538 = vmatpush3.bf16.msra.mxu1 %v1731_v56  ;;  %v1772_v55 = vld [vmem:[#allocation8 + $0x80] sm:$0xff]  }
 0x14f   :  { %961 = vmatprep.subr.bf16.mxu0 %v1734_v57  ;;  %1545 = vmatprep.subr.bf16.mxu1 %v1756_v13  ;;  %v1773_v57 = vld [vmem:[#allocation8 + $0x88] sm:$0xff]  }
 0x151   :  { %1059 = vmatmul.mubr.bf16.vlgmr.msra.gmra.mrb[8].mxu1 %v245_v58 }
 0x152   :  { %962 = vmatpush1.bf16.msra.mxu0 %v1732_v59  ;;  %1546 = vmatpush3.bf16.msra.mxu1 %v1757_v14  ;;  %v1778_v59 = vld [vmem:[#allocation8 + $0xb0] sm:$0xff]  }
 0x153   :  { %963 = vmatprep.subr.bf16.mxu0 %v1737_v60  ;;  %1547 = vmatprep.subr.bf16.mxu1 %v1758_v15  ;;  %v1779_v60 = vld [vmem:[#allocation8 + $0xb8] sm:$0xff]  }
 0x156   :  { %964 = vmatpush1.bf16.msra.mxu0 %v1735_v61  ;;  %1548 = vmatpush3.bf16.msra.mxu1 %v1759_v16 }
 0x157   :  { %965 = vmatprep.subr.bf16.mxu0 %v1740_v0  ;;  %1549 = vmatprep.subr.bf16.mxu1 %v1760_v17 }
 0x15a   :  { %966 = vmatpush1.bf16.msra.mxu0 %v1738_v2  ;;  %1550 = vmatpush3.bf16.msra.mxu1 %v1761_v18 }
 0x15b   :  { %967 = vmatprep.subr.bf16.mxu0 %v1743_v3  ;;  %1551 = vmatprep.subr.bf16.mxu1 %v1762_v19 }
 0x15e   :  { %968 = vmatpush1.bf16.msra.mxu0 %v1741_v4  ;;  %1552 = vmatpush3.bf16.msra.mxu1 %v1763_v20 }
 0x15f   :  { %969 = vmatprep.subr.bf16.mxu0 %v1746_v5  ;;  %1553 = vmatprep.subr.bf16.mxu1 %v1764_v21 }
 0x162   :  { %970 = vmatpush1.bf16.msra.mxu0 %v1744_v6  ;;  %1554 = vmatpush3.bf16.msra.mxu1 %v1765_v22 }
 0x163   :  { %971 = vmatprep.subr.bf16.mxu0 %v1749_v7  ;;  %1555 = vmatprep.subr.bf16.mxu1 %v1766_v23  ;;  %v1476_v7 = vld [vmem:[%s2053_s6] ss:$0 sm:$0xff] }
 0x166   :  { %972 = vmatpush1.bf16.msra.mxu0 %v1747_v8  ;;  %1556 = vmatpush3.bf16.msra.mxu1 %v1767_v24 }
 0x167   :  { %973 = vmatprep.subr.bf16.mxu0 %v1752_v9  ;;  %1557 = vmatprep.subr.bf16.mxu1 %v1768_v25 }
 0x16a   :  { %974 = vmatpush1.bf16.msra.mxu0 %v1750_v10  ;;  %1558 = vmatpush3.bf16.msra.mxu1 %v1769_v26 }
 0x16b   :  { %975 = vmatprep.subr.bf16.mxu0 %v1755_v11  ;;  %1559 = vmatprep.subr.bf16.mxu1 %v1770_v27 }
 0x16e   :  { %976 = vmatpush1.bf16.msra.mxu0 %v1753_v12  ;;  %1560 = vmatpush3.bf16.msra.mxu1 %v1771_v28 }
 0x16f   :  { %1576 = vmatprep.subr.bf16.mxu1 %v1911_v29 }
 0x171   :  { %978 = vmatmul.mubr.bf16.vlgmr.msra.gmra.mrb[4].mxu0 %v245_v58  ;;  %v1777_v58 = vld [vmem:[#allocation8 + $0xa8] sm:$0xff]  }
 0x204   :  { %v1517_v30 = vpop.f32.mrb[4].mxu1 }
 0x205   :  { %v1518_v31 = vpop.f32.mrb[5].mxu1 }
 0x206   :  { %v1519_v32 = vadd.f32 %v1518_v31, %v1517_v30  ;;  %v1520_v33 = vpop.f32.mrb[6].mxu1 }
 0x207   :  { %v1521_v34 = vpop.f32.mrb[7].mxu1 }
 0x208   :  { %v1021_v40 = vadd.f32 %v1519_v32, %v388_v36 }
 0x224   :  { %v1539_v37 = vpop.f32.mrb[8].mxu1 }
 0x225   :  { %v1540_v38 = vpop.f32.mrb[9].mxu1 }
 0x226   :  { %v1541_v41 = vadd.f32 %v1540_v38, %v1539_v37  ;;  %v1542_v42 = vpop.f32.mrb[10].mxu1 }
 0x227   :  { %v1543_v43 = vpop.f32.mrb[11].mxu1 }
 0x228   :  { %v1061_v44 = vadd.f32 %v1541_v41, %v1021_v40 }
 0x22a   :  { %v1068_v61 = vmax.f32 %v1061_v44, 0.0 }
 0x22c   :  { %v1071_v0 = vpack.c.bf16 %v1068_v61, %v1068_v61 }
 0x244   :  { %v979_v47 = vpop.f32.mrb[4].mxu0 }
 0x245   :  { %v1596_v48 = vadd.f32 %v979_v47, %v380_v45  ;;  %v981_v49 = vpop.f32.mrb[5].mxu0 }
 0x246   :  { %v1597_v50 = vadd.f32 %v981_v49, %v384_v46  ;;  %v983_v51 = vpop.f32.mrb[6].mxu0 }
 0x247   :  { %v1066_v52 = vmax.f32 %v1596_v48, 0.0  ;;  %v984_v39 = vpop.f32.mrb[7].mxu0 }
 0x248   :  { %v1067_v53 = vmax.f32 %v1597_v50, 0.0 }
 0x249   :  { %v1069_v56 = vpack.c.bf16 %v1066_v52, %v1066_v52 }
 0x24a   :  { %v1070_v54 = vpack.c.bf16 %v1067_v53, %v1067_v53 }
 0x24c   :  { %1303 = vmatprep.mubr.bf16.mxu1 %v1070_v54 }
 0x24d   :  { %1304 = vmatmul.mubr.bf16.vlgmr.msra.gmra.mrb[12].mxu1 %v1069_v56 }
 0x24e   :  { %1577 = vmatpush3.bf16.msra.mxu1 %v1772_v55  ;;  %1592 = vmatprep.mubr.msk.bf16.mxu1 %vm1912_vm1, %v1911_v29 }
 0x24f   :  { %1578 = vmatprep.subr.bf16.mxu1 %v1911_v29 }
 0x252   :  { %1579 = vmatpush3.bf16.msra.mxu1 %v1773_v57 }
 0x253   :  { %1580 = vmatprep.subr.bf16.mxu1 %v1911_v29 }
 0x256   :  { %1581 = vmatpush3.bf16.msra.mxu1 %v1774_v62 }
 0x257   :  { %1582 = vmatprep.subr.bf16.mxu1 %v1911_v29 }
 0x25a   :  { %1583 = vmatpush3.bf16.msra.mxu1 %v1775_v63 }
 0x25b   :  { %1584 = vmatprep.subr.bf16.mxu1 %v1911_v29 }
 0x25e   :  { %1585 = vmatpush3.bf16.msra.mxu1 %v1776_v1 }
 0x25f   :  { %1586 = vmatprep.subr.bf16.mxu1 %v1911_v29 }
 0x262   :  { %1587 = vmatpush3.bf16.msra.mxu1 %v1777_v58 }
 0x263   :  { %1588 = vmatprep.subr.bf16.mxu1 %v1911_v29 }
 0x266   :  { %1589 = vmatpush3.bf16.msra.mxu1 %v1778_v59 }
 0x267   :  { %1590 = vmatprep.subr.bf16.mxu1 %v1911_v29 }
 0x26a   :  { %1591 = vmatpush3.bf16.msra.mxu1 %v1779_v60 }
 0x26d   :  { %1593 = vmatmul.mubr.bf16.vlgmr.msra.gmra.mrb[16].mxu1 %v1071_v0 }
 0x320   :  { %v1561_v2 = vpop.f32.mrb[12].mxu1 }
 0x321   :  { %v1562_v3 = vpop.f32.mrb[13].mxu1 }
 0x322   :  { %v1563_v4 = vadd.f32 %v1562_v3, %v1561_v2  ;;  %v1564_v5 = vpop.f32.mrb[14].mxu1 }
 0x323   :  { %v1565_v6 = vpop.f32.mrb[15].mxu1 }
 0x324   :  { %v1306_v8 = vadd.f32 %v1563_v4, %v1476_v7 }
 0x340   :  { %v1345_v9 = vpop.f32.mrb[16].mxu1 }
 0x341   :  { %v1346_v10 = vadd.f32 %v1345_v9, %v1306_v8  ;;  %v1594_v11 = vpop.f32.mrb[17].mxu1 }
 0x342   :  { %v1348_v12 = vpop.f32.mrb[18].mxu1 }
 0x343   :  { %1780 = vtanh.f32 %v1346_v10  ;;  %v1595_v13 = vpop.f32.mrb[19].mxu1 }
 0x34d   :  { %v1781_v14 = vpop.eup %1780 }
 0x34e   :  { %1352 = vst [vmem:[#allocation10] sm:$0xff] %v1781_v14 }
 0x34f   :  { %1881 = shalt.err (!%p1878_p8)
}
 0x350   :  { %s1882_s12 = scalar_lea.hbm %s2054_s7, 128 }
 0x351   :  { %p1883_p9 = scmp.ne.s32.totalorder %s2054_s7, %s1882_s12  ;;  %p1886_p10 = scmp.lt.u32.totalorder %s1882_s12, %s2054_s7 }
 0x353   :  { %p1888_p11 = pnand %p1886_p10, %p1883_p9 }
 0x355   :  { %1891 = shalt.err (!%p1888_p11)
}
 0x356   :  { %1362 = dma.vmem_to_hbm [thread:$0]  %s1360_s9, 128, %s2054_s7, [#allocation4]  }
 0x357   :  { %1898 = dma.done.wait [#allocation4], 128  }
 0x358   :  { %1899 = vsyncadd [#allocation4], 4294967168 }
 0x359   :  { %1366 = vsyncpa [#allocation3], 1 }
 0x35a   :  { %1367 = vsyncpa [#allocation6], 1 }
 0x35b   :  { %1368 = vsyncpa [#allocation9], 1 }
 0x35c   :  { %1369 = vsyncpa [#allocation4], 1 }

// kernel: tpu_custom_call.1
= control target key start
LH: loop header
LB: loop body
LE: loop exit
PB: predicated region body
PF: predicated region fallthrough
CT: control target
= control target key end

     0   :  { %12 = vsyncpa [#allocation3], 0  ;;  %s2047_s0 = inlined_call_operand.hbm [shape: f32[8,32], index: 0, kind: input, shape index: {}]   ;;  %s2048_s1 = inlined_call_operand.hbm [shape: bf16[32,512], index: 1, kind: input, shape index: {}]   ;;  %s2049_s2 = inlined_call_operand.vmem [shape: f32[1,512], index: 2, kind: input, shape index: {}]   ;;  %s2050_s3 = inlined_call_operand.hbm [shape: bf16[512,384], index: 3, kind: input, shape index: {}]   ;;  %s2051_s4 = inlined_call_operand.vmem [shape: f32[1,384], index: 4, kind: input, shape index: {}]   ;;  %s2052_s5 = inlined_call_operand.hbm [shape: bf16[384,128], index: 5, kind: input, shape index: {}]   ;;  %s2053_s6 = inlined_call_operand.vmem [shape: f32[1,128], index: 6, kind: input, shape index: {}]   ;;  %s2054_s7 = inlined_call_operand.hbm [shape: f32[8,128], index: 7, kind: output, shape index: {}]  }
   0x1   :  { %13 = vsyncpa [#allocation6], 0 }
   0x2   :  { %14 = vsyncpa [#allocation9], 0 }
   0x3   :  { %15 = vsyncpa [#allocation4], 0  ;;  %s1900_s24 = smov [#allocation5]   ;;  %s1782_s28 = scalar_lea.hbm %s2048_s1, 1024 }
   0x4   :  { %s31_s25 = sshll.u32 %s1900_s24, 4  ;;  %p1783_p0 = scmp.ne.s32.totalorder %s2048_s1, %s1782_s28  ;;  %s32_s25 = int_to_ptr.vmem [resolvable:$true] %s31_s25 }
   0x5   :  { %p1786_p1 = scmp.lt.u32.totalorder %s1782_s28, %s2048_s1 }
   0x7   :  { %p1788_p2 = pnand %p1786_p1, %p1783_p0 }
   0x9   :  { %1791 = shalt.err (!%p1788_p2)
}
   0xa   :  { %s1792_s10 = scalar_lea.vmem %s32_s25, 1024  ;;  %p1797_p4 = scmp.lt.s32.totalorder %s32_s25, %s32_s25 }
   0xb   :  { %p1793_p3 = scmp.ne.s32.totalorder %s32_s25, %s1792_s10  ;;  %p1798_p5 = scmp.lt.s32.totalorder %s1792_s10, %s1792_s10 }
   0xd   :  { %p1799_p6 = por %p1798_p5, %p1797_p4 }
   0xf   :  { %p1800_p7 = pnand %p1799_p6, %p1793_p3 }
  0x11   :  { %1803 = shalt.err (!%p1800_p7)
}
  0x12   :  { %s1901_s11 = smov 256   ;;  %s1902_s12 = smov 16  }
  0x13   :  { %37 = dma.hbm_to_vmem [thread:$0]  %s2048_s1, 1024, %s32_s25, [#allocation6], %s1901_s11, %s1901_s11, %s1902_s12  }
  0x14   :  { %s1903_s15 = smov [#allocation2]   ;;  %s1904_s17 = smov [#allocation7]  }
  0x15   :  { %s22_s16 = sshll.u32 %s1903_s15, 4  ;;  %s45_s18 = sshll.u32 %s1904_s17, 4  ;;  %s23_s16 = int_to_ptr.vmem [resolvable:$true] %s22_s16  ;;  %s46_s18 = int_to_ptr.vmem [resolvable:$true] %s45_s18 }
  0x16   :  { %s1804_s21 = scalar_lea.hbm %s2047_s0, 128 }
  0x17   :  { %p1805_p8 = scmp.ne.s32.totalorder %s2047_s0, %s1804_s21  ;;  %p1808_p9 = scmp.lt.u32.totalorder %s1804_s21, %s2047_s0 }
  0x19   :  { %p1810_p10 = pnand %p1808_p9, %p1805_p8 }
  0x1b   :  { %1813 = shalt.err (!%p1810_p10)
}
  0x1c   :  { %s1814_s1 = scalar_lea.vmem %s23_s16, 128  ;;  %p1819_p12 = scmp.lt.s32.totalorder %s23_s16, %s23_s16 }
  0x1d   :  { %p1815_p11 = scmp.ne.s32.totalorder %s23_s16, %s1814_s1  ;;  %p1820_p13 = scmp.lt.s32.totalorder %s1814_s1, %s1814_s1 }
  0x1f   :  { %p1821_p0 = por %p1820_p13, %p1819_p12 }
  0x21   :  { %p1822_p1 = pnand %p1821_p0, %p1815_p11 }
  0x23   :  { %1825 = shalt.err (!%p1822_p1)
}
  0x24   :  { %25 = dma.hbm_to_vmem [thread:$0]  %s2047_s0, 128, %s23_s16, [#allocation3]  }
  0x25   :  { %s1826_s30 = scalar_lea.hbm %s2050_s3, 12288 }
  0x26   :  { %p1827_p2 = scmp.ne.s32.totalorder %s2050_s3, %s1826_s30  ;;  %p1830_p3 = scmp.lt.u32.totalorder %s1826_s30, %s2050_s3 }
  0x28   :  { %p1832_p4 = pnand %p1830_p3, %p1827_p2 }
  0x2a   :  { %1835 = shalt.err (!%p1832_p4)
}
  0x2b   :  { %s1836_s12 = scalar_lea.vmem %s46_s18, 12288  ;;  %p1841_p6 = scmp.lt.s32.totalorder %s46_s18, %s46_s18 }
  0x2c   :  { %p1837_p5 = scmp.ne.s32.totalorder %s46_s18, %s1836_s12  ;;  %p1842_p7 = scmp.lt.s32.totalorder %s1836_s12, %s1836_s12 }
  0x2e   :  { %p1843_p8 = por %p1842_p7, %p1841_p6 }
  0x30   :  { %p1844_p9 = pnand %p1843_p8, %p1837_p5 }
  0x32   :  { %1847 = shalt.err (!%p1844_p9)
}
  0x33   :  { %s1905_s0 = smov 192   ;;  %s1906_s13 = smov 12  }
  0x34   :  { %51 = dma.hbm_to_vmem [thread:$0]  %s2050_s3, 12288, %s46_s18, [#allocation6], %s1905_s0, %s1905_s0, %s1906_s13  }
  0x35   :  { %s1907_s16 = smov [#allocation8]   ;;  %s1848_s21 = scalar_lea.hbm %s2052_s5, 3072 }
  0x36   :  { %s59_s17 = sshll.u32 %s1907_s16, 4  ;;  %p1849_p10 = scmp.ne.s32.totalorder %s2052_s5, %s1848_s21  ;;  %s60_s17 = int_to_ptr.vmem [resolvable:$true] %s59_s17 }
  0x37   :  { %p1852_p11 = scmp.lt.u32.totalorder %s1848_s21, %s2052_s5 }
  0x39   :  { %p1854_p12 = pnand %p1852_p11, %p1849_p10 }
  0x3b   :  { %1857 = shalt.err (!%p1854_p12)
}
  0x3c   :  { %s1858_s1 = scalar_lea.vmem %s60_s17, 3072  ;;  %p1863_p0 = scmp.lt.s32.totalorder %s60_s17, %s60_s17 }
  0x3d   :  { %p1859_p13 = scmp.ne.s32.totalorder %s60_s17, %s1858_s1  ;;  %p1864_p1 = scmp.lt.s32.totalorder %s1858_s1, %s1858_s1 }
  0x3f   :  { %p1865_p2 = por %p1864_p1, %p1863_p0 }
  0x41   :  { %p1866_p3 = pnand %p1865_p2, %p1859_p13 }
  0x43   :  { %1869 = shalt.err (!%p1866_p3)
}
  0x44   :  { %s1908_s3 = smov 64   ;;  %s1909_s18 = smov 4  }
  0x45   :  { %65 = dma.hbm_to_vmem [thread:$0]  %s2052_s5, 3072, %s60_s17, [#allocation9], %s1908_s3, %s1908_s3, %s1909_s18  }
  0x46   :  { %1892 = dma.done.wait [#allocation3], 128  }
  0x47   :  { %1893 = vsyncadd [#allocation3], 4294967168 }
  0x48   :  { %1894 = dma.done.wait [#allocation6], 13312  }
  0x49   :  { %1895 = vsyncadd [#allocation6], 4294953984 }
  0x4a   :  { %1896 = dma.done.wait [#allocation9], 3072  }
  0x4b   :  { %1897 = vsyncadd [#allocation9], 4294964224  ;;  %v1910_v0 = vmov 0   ;;  %v1616_v1 = vld [vmem:[#allocation5 + $0x4] ss:$16 sps:$4 sm:$0xff]   ;;  %v81_v5 = vld [vmem:[#allocation2] sm:$0xff]  ;;  %v93_v61 = vlaneseq }
  0x4c   :  { %189 = vmatprep.mubr.bf16.mxu0 %v1910_v0  ;;  %230 = vmatprep.mubr.bf16.mxu1 %v1910_v0  ;;  %v1618_v2 = vld [vmem:[#allocation5] ss:$16 sps:$4 sm:$0xff]   ;;  %v1619_v3 = vld [vmem:[#allocation5 + $0x24] ss:$16 sps:$4 sm:$0xff]   ;;  %v1622_v6 = vld [vmem:[#allocation5 + $0xc] ss:$16 sps:$4 sm:$0xff]   ;;  %v82_v9 = vpack.c.bf16 %v81_v5, %v81_v5 }
  0x4d   :  { %157 = vmatprep.subr.bf16.mxu0 %v1616_v1  ;;  %v1621_v4 = vld [vmem:[#allocation5 + $0x20] ss:$16 sps:$4 sm:$0xff]   ;;  %v1624_v7 = vld [vmem:[#allocation5 + $0x8] ss:$16 sps:$4 sm:$0xff]   ;;  %198 = vmatprep.subr.bf16.mxu1 %v1622_v6  ;;  %v1625_v8 = vld [vmem:[#allocation5 + $0x2c] ss:$16 sps:$4 sm:$0xff]  }
  0x4e   :  { %158 = vmatpush1.bf16.msra.mxu0 %v1618_v2  ;;  %199 = vmatpush1.bf16.msra.mxu1 %v1624_v7  ;;  %v1627_v10 = vld [vmem:[#allocation5 + $0x28] ss:$16 sps:$4 sm:$0xff]   ;;  %v1630_v11 = vld [vmem:[#allocation7 + $0x4] ss:$12 sps:$4 sm:$0xff]   ;;  %vm153_vm0 = vcmask 261120   ;;  %v2002_v62 = vshrl.u32 %v93_v61, 7 }
  0x4f   :  { %159 = vmatprep.subr.bf16.mxu0 %v1619_v3  ;;  %200 = vmatprep.subr.bf16.mxu1 %v1625_v8  ;;  %v1628_v12 = vld [vmem:[#allocation7] ss:$12 sps:$4 sm:$0xff]   ;;  %v1633_v13 = vld [vmem:[#allocation7 + $0x1c] ss:$12 sps:$4 sm:$0xff]   ;;  %v1631_v14 = vld [vmem:[#allocation7 + $0x18] ss:$12 sps:$4 sm:$0xff]  }
  0x50   :  { %v1636_v15 = vld [vmem:[#allocation7 + $0x34] ss:$12 sps:$4 sm:$0xff]   ;;  %v1634_v16 = vld [vmem:[#allocation7 + $0x30] ss:$12 sps:$4 sm:$0xff]   ;;  %v1639_v17 = vld [vmem:[#allocation7 + $0x4c] ss:$12 sps:$4 sm:$0xff]  }
  0x51   :  { %v1637_v18 = vld [vmem:[#allocation7 + $0x48] ss:$12 sps:$4 sm:$0xff]   ;;  %v1642_v21 = vld [vmem:[#allocation7 + $0x64] ss:$12 sps:$4 sm:$0xff]   ;;  %v1660_v22 = vld [vmem:[#allocation7 + $0xe0] ss:$12 sps:$4 sm:$0xff]  }
  0x52   :  { %160 = vmatpush1.bf16.msra.mxu0 %v1621_v4  ;;  %201 = vmatpush1.bf16.msra.mxu1 %v1627_v10  ;;  %v1655_v19 = vld [vmem:[#allocation7 + $0xc8] ss:$12 sps:$4 sm:$0xff]   ;;  %v1661_v23 = vld [vmem:[#allocation7 + $0x20] ss:$12 sps:$4 sm:$0xff]   ;;  %v1665_v26 = vld [vmem:[#allocation7 + $0xf8] ss:$12 sps:$4 sm:$0xff]  }
  0x53   :  { %904 = vmatprep.subr.bf16.mxu0 %v1630_v11  ;;  %v1656_v20 = vld [vmem:[#allocation7 + $0x8] ss:$12 sps:$4 sm:$0xff]   ;;  %1501 = vmatprep.subr.bf16.mxu1 %v1655_v19  ;;  %v1640_v24 = vld [vmem:[#allocation7 + $0x60] ss:$12 sps:$4 sm:$0xff]   ;;  %v1666_v27 = vld [vmem:[#allocation7 + $0x38] ss:$12 sps:$4 sm:$0xff]  }
  0x54   :  { %v1645_v25 = vld [vmem:[#allocation7 + $0x7c] ss:$12 sps:$4 sm:$0xff]   ;;  %v1643_v28 = vld [vmem:[#allocation7 + $0x78] ss:$12 sps:$4 sm:$0xff]   ;;  %v1648_v29 = vld [vmem:[#allocation7 + $0x94] ss:$12 sps:$4 sm:$0xff]  }
  0x55   :  { %1378 = vmatmul.mubr.msk.bf16.vlgmr.msra.gmra.mrb[0].mxu0 %vm153_vm0, %v82_v9  ;;  %1379 = vmatmul.mubr.msk.bf16.vlgmr.msra.gmra.mrb[0].mxu1 %vm153_vm0, %v82_v9  ;;  %v1670_v30 = vld [vmem:[#allocation7 + $0x110] ss:$12 sps:$4 sm:$0xff]   ;;  %v1675_v33 = vld [vmem:[#allocation7 + $0x128] ss:$12 sps:$4 sm:$0xff]   ;;  %v1651_v34 = vld [vmem:[#allocation7 + $0xac] ss:$12 sps:$4 sm:$0xff]  }
  0x56   :  { %905 = vmatpush1.bf16.msra.mxu0 %v1628_v12  ;;  %1502 = vmatpush3.bf16.msra.mxu1 %v1656_v20  ;;  %v1671_v31 = vld [vmem:[#allocation7 + $0x50] ss:$12 sps:$4 sm:$0xff]   ;;  %v1676_v35 = vld [vmem:[#allocation7 + $0x68] ss:$12 sps:$4 sm:$0xff]   ;;  %v1680_v37 = vld [vmem:[#allocation7 + $0x140] ss:$12 sps:$4 sm:$0xff]  }
  0x57   :  { %906 = vmatprep.subr.bf16.mxu0 %v1633_v13  ;;  %1503 = vmatprep.subr.bf16.mxu1 %v1660_v22  ;;  %v1646_v32 = vld [vmem:[#allocation7 + $0x90] ss:$12 sps:$4 sm:$0xff]   ;;  %v1649_v36 = vld [vmem:[#allocation7 + $0xa8] ss:$12 sps:$4 sm:$0xff]   ;;  %v1681_v39 = vld [vmem:[#allocation7 + $0x80] ss:$12 sps:$4 sm:$0xff]  }
  0x58   :  { %v1654_v38 = vld [vmem:[#allocation7 + $0xc4] ss:$12 sps:$4 sm:$0xff]   ;;  %v1652_v40 = vld [vmem:[#allocation7 + $0xc0] ss:$12 sps:$4 sm:$0xff]   ;;  %v1659_v41 = vld [vmem:[#allocation7 + $0xdc] ss:$12 sps:$4 sm:$0xff]  }
  0x59   :  { %v1657_v42 = vld [vmem:[#allocation7 + $0xd8] ss:$12 sps:$4 sm:$0xff]   ;;  %v1664_v43 = vld [vmem:[#allocation7 + $0xf4] ss:$12 sps:$4 sm:$0xff]   ;;  %v1662_v44 = vld [vmem:[#allocation7 + $0xf0] ss:$12 sps:$4 sm:$0xff]  }
  0x5a   :  { %907 = vmatpush1.bf16.msra.mxu0 %v1631_v14  ;;  %1504 = vmatpush3.bf16.msra.mxu1 %v1661_v23  ;;  %v1669_v45 = vld [vmem:[#allocation7 + $0x10c] ss:$12 sps:$4 sm:$0xff]   ;;  %v1667_v46 = vld [vmem:[#allocation7 + $0x108] ss:$12 sps:$4 sm:$0xff]   ;;  %v1674_v47 = vld [vmem:[#allocation7 + $0x124] ss:$12 sps:$4 sm:$0xff]  }
  0x5b   :  { %908 = vmatprep.subr.bf16.mxu0 %v1636_v15  ;;  %1505 = vmatprep.subr.bf16.mxu1 %v1665_v26  ;;  %v1672_v48 = vld [vmem:[#allocation7 + $0x120] ss:$12 sps:$4 sm:$0xff]   ;;  %v1679_v49 = vld [vmem:[#allocation7 + $0x13c] ss:$12 sps:$4 sm:$0xff]   ;;  %v1677_v50 = vld [vmem:[#allocation7 + $0x138] ss:$12 sps:$4 sm:$0xff]  }
  0x5c   :  { %v1684_v51 = vld [vmem:[#allocation7 + $0x154] ss:$12 sps:$4 sm:$0xff]   ;;  %v1685_v52 = vld [vmem:[#allocation7 + $0x158] ss:$12 sps:$4 sm:$0xff]   ;;  %v1682_v53 = vld [vmem:[#allocation7 + $0x150] ss:$12 sps:$4 sm:$0xff]  }
  0x5d   :  { %v1686_v54 = vld [vmem:[#allocation7 + $0x98] ss:$12 sps:$4 sm:$0xff]   ;;  %v1690_v56 = vld [vmem:[#allocation7 + $0x170] ss:$12 sps:$4 sm:$0xff]   ;;  %v1687_v57 = vld [vmem:[#allocation7 + $0x168] ss:$12 sps:$4 sm:$0xff]  }
  0x5e   :  { %909 = vmatpush1.bf16.msra.mxu0 %v1634_v16  ;;  %1506 = vmatpush3.bf16.msra.mxu1 %v1666_v27  ;;  %v1689_v55 = vld [vmem:[#allocation7 + $0x16c] ss:$12 sps:$4 sm:$0xff]   ;;  %v1691_v58 = vld [vmem:[#allocation7 + $0xb0] ss:$12 sps:$4 sm:$0xff]   ;;  %v1695_v60 = vld [vmem:[#allocation7 + $0x248] ss:$12 sps:$4 sm:$0xff]  }
  0x5f   :  { %910 = vmatprep.subr.bf16.mxu0 %v1639_v17  ;;  %1507 = vmatprep.subr.bf16.mxu1 %v1670_v30  ;;  %v1694_v59 = vld [vmem:[#allocation7 + $0x184] ss:$12 sps:$4 sm:$0xff]   ;;  %v95_v63 = vsub.s32 0, %v2002_v62  ;;  %v2008_v0 = vld [vmem:[%s2049_s2] sm:$0xf]  ;;  %v99_v1 = vsub.s32 1, %v2002_v62 }
  0x60   :  { %v107_v3 = vsub.s32 3, %v2002_v62  ;;  %v1692_v19 = vld [vmem:[#allocation7 + $0x180] ss:$12 sps:$4 sm:$0xff]   ;;  %v1696_v20 = vld [vmem:[#allocation7 + $0x188] ss:$12 sps:$4 sm:$0xff]   ;;  %vm1912_vm1 = vmmov 0  }
  0x61   :  { %v96_v2 = vrot.slane %v2008_v0, %v95_v63  ;;  %v100_v4 = vrot.slane %v2008_v0, %v99_v1  ;;  %v1699_v23 = vld [vmem:[#allocation7 + $0x19c] ss:$12 sps:$4 sm:$0xff]   ;;  %v1697_v27 = vld [vmem:[#allocation7 + $0x198] ss:$12 sps:$4 sm:$0xff]   ;;  %s1913_s8 = smov [#allocation10]  }
  0x62   :  { %911 = vmatpush1.bf16.msra.mxu0 %v1637_v18  ;;  %1508 = vmatpush3.bf16.msra.mxu1 %v1671_v31  ;;  %v108_v8 = vrot.slane %v2008_v0, %v107_v3  ;;  %v1705_v30 = vld [vmem:[#allocation7 + $0x278] ss:$12 sps:$4 sm:$0xff]   ;;  %v1702_v31 = vld [vmem:[#allocation7 + $0x1b0] ss:$12 sps:$4 sm:$0xff]   ;;  %s1359_s9 = sshll.u32 %s1913_s8, 4  ;;  %s1360_s9 = int_to_ptr.vmem [resolvable:$true] %s1359_s9 }
  0x63   :  { %912 = vmatprep.subr.bf16.mxu0 %v1642_v21  ;;  %1509 = vmatprep.subr.bf16.mxu1 %v1675_v33  ;;  %v1709_v33 = vld [vmem:[#allocation7 + $0x1cc] ss:$12 sps:$4 sm:$0xff]   ;;  %s1870_s10 = scalar_lea.vmem %s1360_s9, 128  ;;  %p1875_p5 = scmp.lt.s32.totalorder %s1360_s9, %s1360_s9 }
  0x64   :  { %v1735_v61 = vld [vmem:[#allocation7 + $0x258] ss:$12 sps:$4 sm:$0xff]   ;;  %p1871_p4 = scmp.ne.s32.totalorder %s1360_s9, %s1870_s10  ;;  %p1876_p6 = scmp.lt.s32.totalorder %s1870_s10, %s1870_s10 }
  0x65   :  { %v1743_v3 = vld [vmem:[#allocation7 + $0x28c] ss:$12 sps:$4 sm:$0xff]  }
  0x66   :  { %913 = vmatpush1.bf16.msra.mxu0 %v1640_v24  ;;  %1510 = vmatpush3.bf16.msra.mxu1 %v1676_v35  ;;  %v1700_v24 = vld [vmem:[#allocation7 + $0x260] ss:$12 sps:$4 sm:$0xff]   ;;  %v1707_v35 = vld [vmem:[#allocation7 + $0x1c8] ss:$12 sps:$4 sm:$0xff]   ;;  %p1877_p7 = por %p1876_p6, %p1875_p5 }
  0x67   :  { %914 = vmatprep.subr.bf16.mxu0 %v1645_v25  ;;  %1511 = vmatprep.subr.bf16.mxu1 %v1680_v37  ;;  %v1714_v37 = vld [vmem:[#allocation7 + $0x1e4] ss:$12 sps:$4 sm:$0xff]  }
  0x68   :  { %p1878_p8 = pnand %p1877_p7, %p1871_p4 }
  0x6a   :  { %915 = vmatpush1.bf16.msra.mxu0 %v1643_v28  ;;  %1512 = vmatpush3.bf16.msra.mxu1 %v1681_v39  ;;  %v1701_v28 = vld [vmem:[#allocation7 + $0x1a0] ss:$12 sps:$4 sm:$0xff]   ;;  %v103_v39 = vsub.s32 2, %v2002_v62  ;;  %v1774_v62 = vld [vmem:[#allocation8 + $0x90] sm:$0xff]  }
  0x6b   :  { %916 = vmatprep.subr.bf16.mxu0 %v1648_v29  ;;  %1513 = vmatprep.subr.bf16.mxu1 %v1685_v52  ;;  %v1704_v29 = vld [vmem:[#allocation7 + $0x1b4] ss:$12 sps:$4 sm:$0xff]   ;;  %v1729_v52 = vld [vmem:[#allocation7 + $0x22c] ss:$12 sps:$4 sm:$0xff]  }
  0x6e   :  { %917 = vmatpush1.bf16.msra.mxu0 %v1646_v32  ;;  %1514 = vmatpush3.bf16.msra.mxu1 %v1686_v54  ;;  %v1706_v32 = vld [vmem:[#allocation7 + $0x1b8] ss:$12 sps:$4 sm:$0xff]  }
  0x6f   :  { %918 = vmatprep.subr.bf16.mxu0 %v1651_v34  ;;  %1515 = vmatprep.subr.bf16.mxu1 %v1690_v56  ;;  %v1710_v34 = vld [vmem:[#allocation7 + $0x290] ss:$12 sps:$4 sm:$0xff]  }
  0x70   :  { %v1731_v56 = vld [vmem:[#allocation7 + $0x230] ss:$12 sps:$4 sm:$0xff]  }
  0x72   :  { %919 = vmatpush1.bf16.msra.mxu0 %v1649_v36  ;;  %1516 = vmatpush3.bf16.msra.mxu1 %v1691_v58  ;;  %v1711_v36 = vld [vmem:[#allocation7 + $0x1d0] ss:$12 sps:$4 sm:$0xff]  }
  0x73   :  { %920 = vmatprep.subr.bf16.mxu0 %v1654_v38  ;;  %1523 = vmatprep.subr.bf16.mxu1 %v1695_v60  ;;  %v1715_v38 = vld [vmem:[#allocation7 + $0x2a8] ss:$12 sps:$4 sm:$0xff]  }
  0x74   :  { %v1737_v60 = vld [vmem:[#allocation7 + $0x25c] ss:$12 sps:$4 sm:$0xff]  }
  0x76   :  { %921 = vmatpush1.bf16.msra.mxu0 %v1652_v40  ;;  %v1712_v40 = vld [vmem:[#allocation7 + $0x1e0] ss:$12 sps:$4 sm:$0xff]  }
  0x77   :  { %922 = vmatprep.subr.bf16.mxu0 %v1659_v41  ;;  %v1716_v41 = vld [vmem:[#allocation7 + $0x1e8] ss:$12 sps:$4 sm:$0xff]  }
  0x7a   :  { %923 = vmatpush1.bf16.msra.mxu0 %v1657_v42  ;;  %v1719_v42 = vld [vmem:[#allocation7 + $0x1fc] ss:$12 sps:$4 sm:$0xff]  }
  0x7b   :  { %924 = vmatprep.subr.bf16.mxu0 %v1664_v43  ;;  %v1720_v43 = vld [vmem:[#allocation7 + $0x2c0] ss:$12 sps:$4 sm:$0xff]  }
  0x7e   :  { %925 = vmatpush1.bf16.msra.mxu0 %v1662_v44  ;;  %v104_v44 = vrot.slane %v2008_v0, %v103_v39  ;;  %v1740_v0 = vld [vmem:[#allocation7 + $0x274] ss:$12 sps:$4 sm:$0xff]  }
  0x7f   :  { %926 = vmatprep.subr.bf16.mxu0 %v1669_v45  ;;  %v1717_v45 = vld [vmem:[#allocation7 + $0x1f8] ss:$12 sps:$4 sm:$0xff]  }
  0x82   :  { %927 = vmatpush1.bf16.msra.mxu0 %v1667_v46  ;;  %v1721_v46 = vld [vmem:[#allocation7 + $0x200] ss:$12 sps:$4 sm:$0xff]  }
  0x83   :  { %928 = vmatprep.subr.bf16.mxu0 %v1674_v47  ;;  %v1724_v47 = vld [vmem:[#allocation7 + $0x214] ss:$12 sps:$4 sm:$0xff]  }
  0x86   :  { %929 = vmatpush1.bf16.msra.mxu0 %v1672_v48  ;;  %v1725_v48 = vld [vmem:[#allocation7 + $0x2d8] ss:$12 sps:$4 sm:$0xff]  }
  0x87   :  { %930 = vmatprep.subr.bf16.mxu0 %v1679_v49 }
  0x8a   :  { %931 = vmatpush1.bf16.msra.mxu0 %v1677_v50  ;;  %v1722_v50 = vld [vmem:[#allocation7 + $0x210] ss:$12 sps:$4 sm:$0xff]  }
  0x8b   :  { %932 = vmatprep.subr.bf16.mxu0 %v1684_v51  ;;  %v1726_v51 = vld [vmem:[#allocation7 + $0x218] ss:$12 sps:$4 sm:$0xff]  }
  0x8e   :  { %933 = vmatpush1.bf16.msra.mxu0 %v1682_v53  ;;  %v1730_v53 = vld [vmem:[#allocation7 + $0x2f0] ss:$12 sps:$4 sm:$0xff]  }
  0x8f   :  { %934 = vmatprep.subr.bf16.mxu0 %v1689_v55  ;;  %v1727_v55 = vld [vmem:[#allocation7 + $0x228] ss:$12 sps:$4 sm:$0xff]  }
  0x92   :  { %935 = vmatpush1.bf16.msra.mxu0 %v1687_v57  ;;  %v1734_v57 = vld [vmem:[#allocation7 + $0x244] ss:$12 sps:$4 sm:$0xff]  }
  0x93   :  { %945 = vmatprep.subr.bf16.mxu0 %v1694_v59  ;;  %v1732_v59 = vld [vmem:[#allocation7 + $0x240] ss:$12 sps:$4 sm:$0xff]  }
 0x128   :  { %v191_v5 = vpop.f32.mrb[0].mxu0  ;;  %v232_v13 = vpop.f32.mrb[0].mxu1 }
 0x129   :  { %v192_v6 = vadd.f32 %v191_v5, %v96_v2  ;;  %v193_v7 = vpop.f32.mrb[1].mxu0  ;;  %v234_v15 = vpop.f32.mrb[1].mxu1  ;;  %v233_v49 = vadd.f32 %v232_v13, %v104_v44  ;;  %v1738_v2 = vld [vmem:[#allocation7 + $0x270] ss:$12 sps:$4 sm:$0xff]   ;;  %v1756_v13 = vld [vmem:[#allocation8 + $0x40] sm:$0xff]  }
 0x12a   :  { %v194_v9 = vadd.f32 %v193_v7, %v100_v4  ;;  %v195_v10 = vpop.f32.mrb[2].mxu0  ;;  %v235_v16 = vadd.f32 %v234_v15, %v108_v8  ;;  %v236_v17 = vpop.f32.mrb[2].mxu1  ;;  %v1741_v4 = vld [vmem:[#allocation7 + $0x288] ss:$12 sps:$4 sm:$0xff]   ;;  %v1746_v5 = vld [vmem:[#allocation7 + $0x2a4] ss:$12 sps:$4 sm:$0xff]  }
 0x12b   :  { %v239_v11 = vmax.f32 %v192_v6, 0.0  ;;  %v196_v12 = vpop.f32.mrb[3].mxu0  ;;  %v237_v21 = vpop.f32.mrb[3].mxu1  ;;  %v241_v54 = vmax.f32 %v233_v49, 0.0  ;;  %v1744_v6 = vld [vmem:[#allocation7 + $0x2a0] ss:$12 sps:$4 sm:$0xff]  }
 0x12c   :  { %v240_v14 = vmax.f32 %v194_v9, 0.0  ;;  %v242_v25 = vmax.f32 %v235_v16, 0.0  ;;  %v1749_v7 = vld [vmem:[#allocation7 + $0x2bc] ss:$12 sps:$4 sm:$0xff]   ;;  %v1747_v8 = vld [vmem:[#allocation7 + $0x2b8] ss:$12 sps:$4 sm:$0xff]  }
 0x12d   :  { %v243_v22 = vpack.c.bf16 %v239_v11, %v239_v11  ;;  %v245_v58 = vpack.c.bf16 %v241_v54, %v241_v54  ;;  %v1752_v9 = vld [vmem:[#allocation7 + $0x2d4] ss:$12 sps:$4 sm:$0xff]   ;;  %v1750_v10 = vld [vmem:[#allocation7 + $0x2d0] ss:$12 sps:$4 sm:$0xff]   ;;  %v1755_v11 = vld [vmem:[#allocation7 + $0x2ec] ss:$12 sps:$4 sm:$0xff]  }
 0x12e   :  { %v244_v18 = vpack.c.bf16 %v240_v14, %v240_v14  ;;  %v246_v26 = vpack.c.bf16 %v242_v25, %v242_v25  ;;  %v1753_v12 = vld [vmem:[#allocation7 + $0x2e8] ss:$12 sps:$4 sm:$0xff]   ;;  %v1757_v14 = vld [vmem:[#allocation8] sm:$0xff]  }
 0x12f   :  { %v1758_v15 = vld [vmem:[#allocation8 + $0x48] sm:$0xff]   ;;  %v1760_v17 = vld [vmem:[#allocation8 + $0x50] sm:$0xff]   ;;  %v1764_v21 = vld [vmem:[#allocation8 + $0x60] sm:$0xff]  }
 0x130   :  { %936 = vmatprep.mubr.bf16.mxu0 %v244_v18  ;;  %1018 = vmatprep.mubr.bf16.mxu1 %v244_v18  ;;  %v1759_v16 = vld [vmem:[#allocation8 + $0x8] sm:$0xff]   ;;  %v1761_v18 = vld [vmem:[#allocation8 + $0x10] sm:$0xff]  }
 0x131   :  { %937 = vmatmul.mubr.bf16.vlgmr.msra.gmra.mrb[4].mxu0 %v243_v22  ;;  %1019 = vmatmul.mubr.bf16.vlgmr.msra.gmra.mrb[4].mxu1 %v243_v22  ;;  %v1765_v22 = vld [vmem:[#allocation8 + $0x20] sm:$0xff]   ;;  %v1768_v25 = vld [vmem:[#allocation8 + $0x70] sm:$0xff]  }
 0x132   :  { %946 = vmatpush1.bf16.msra.mxu0 %v1692_v19  ;;  %1524 = vmatpush3.bf16.msra.mxu1 %v1696_v20  ;;  %v1762_v19 = vld [vmem:[#allocation8 + $0x58] sm:$0xff]  }
 0x133   :  { %947 = vmatprep.subr.bf16.mxu0 %v1699_v23  ;;  %1525 = vmatprep.subr.bf16.mxu1 %v1700_v24  ;;  %v1763_v20 = vld [vmem:[#allocation8 + $0x18] sm:$0xff]   ;;  %v1766_v23 = vld [vmem:[#allocation8 + $0x68] sm:$0xff]  }
 0x134   :  { %1058 = vmatprep.mubr.bf16.mxu1 %v246_v26  ;;  %977 = vmatprep.mubr.bf16.mxu0 %v246_v26  ;;  %v1767_v24 = vld [vmem:[#allocation8 + $0x28] sm:$0xff]   ;;  %v1769_v26 = vld [vmem:[#allocation8 + $0x30] sm:$0xff]  }
 0x136   :  { %948 = vmatpush1.bf16.msra.mxu0 %v1697_v27  ;;  %1526 = vmatpush3.bf16.msra.mxu1 %v1701_v28  ;;  %v1770_v27 = vld [vmem:[#allocation8 + $0x78] sm:$0xff]  }
 0x137   :  { %949 = vmatprep.subr.bf16.mxu0 %v1704_v29  ;;  %1527 = vmatprep.subr.bf16.mxu1 %v1705_v30  ;;  %v1771_v28 = vld [vmem:[#allocation8 + $0x38] sm:$0xff]   ;;  %v1911_v29 = vmov 0.0  }
 0x13a   :  { %950 = vmatpush1.bf16.msra.mxu0 %v1702_v31  ;;  %1528 = vmatpush3.bf16.msra.mxu1 %v1706_v32 }
 0x13b   :  { %951 = vmatprep.subr.bf16.mxu0 %v1709_v33  ;;  %1529 = vmatprep.subr.bf16.mxu1 %v1710_v34 }
 0x13e   :  { %952 = vmatpush1.bf16.msra.mxu0 %v1707_v35  ;;  %1530 = vmatpush3.bf16.msra.mxu1 %v1711_v36  ;;  %v375_v35 = vld [vmem:[%s2051_s4] sm:$0x7] }
 0x13f   :  { %953 = vmatprep.subr.bf16.mxu0 %v1714_v37  ;;  %1531 = vmatprep.subr.bf16.mxu1 %v1715_v38  ;;  %v388_v36 = vrot.slane %v375_v35, %v103_v39 }
 0x142   :  { %954 = vmatpush1.bf16.msra.mxu0 %v1712_v40  ;;  %1532 = vmatpush3.bf16.msra.mxu1 %v1716_v41 }
 0x143   :  { %955 = vmatprep.subr.bf16.mxu0 %v1719_v42  ;;  %1533 = vmatprep.subr.bf16.mxu1 %v1720_v43 }
 0x146   :  { %956 = vmatpush1.bf16.msra.mxu0 %v1717_v45  ;;  %1534 = vmatpush3.bf16.msra.mxu1 %v1721_v46  ;;  %v380_v45 = vrot.slane %v375_v35, %v95_v63  ;;  %v384_v46 = vrot.slane %v375_v35, %v99_v1  ;;  %v1775_v63 = vld [vmem:[#allocation8 + $0x98] sm:$0xff]   ;;  %v1776_v1 = vld [vmem:[#allocation8 + $0xa0] sm:$0xff]  }
 0x147   :  { %957 = vmatprep.subr.bf16.mxu0 %v1724_v47  ;;  %1535 = vmatprep.subr.bf16.mxu1 %v1725_v48 }
 0x14a   :  { %958 = vmatpush1.bf16.msra.mxu0 %v1722_v50  ;;  %1536 = vmatpush3.bf16.msra.mxu1 %v1726_v51 }
 0x14b   :  { %959 = vmatprep.subr.bf16.mxu0 %v1729_v52  ;;  %1537 = vmatprep.subr.bf16.mxu1 %v1730_v53 }
 0x14e   :  { %960 = vmatpush1.bf16.msra.mxu0 %v1727_v55  ;;  %1538 = vmatpush3.bf16.msra.mxu1 %v1731_v56  ;;  %v1772_v55 = vld [vmem:[#allocation8 + $0x80] sm:$0xff]  }
 0x14f   :  { %961 = vmatprep.subr.bf16.mxu0 %v1734_v57  ;;  %1545 = vmatprep.subr.bf16.mxu1 %v1756_v13  ;;  %v1773_v57 = vld [vmem:[#allocation8 + $0x88] sm:$0xff]  }
 0x151   :  { %1059 = vmatmul.mubr.bf16.vlgmr.msra.gmra.mrb[8].mxu1 %v245_v58 }
 0x152   :  { %962 = vmatpush1.bf16.msra.mxu0 %v1732_v59  ;;  %1546 = vmatpush3.bf16.msra.mxu1 %v1757_v14  ;;  %v1778_v59 = vld [vmem:[#allocation8 + $0xb0] sm:$0xff]  }
 0x153   :  { %963 = vmatprep.subr.bf16.mxu0 %v1737_v60  ;;  %1547 = vmatprep.subr.bf16.mxu1 %v1758_v15  ;;  %v1779_v60 = vld [vmem:[#allocation8 + $0xb8] sm:$0xff]  }
 0x156   :  { %964 = vmatpush1.bf16.msra.mxu0 %v1735_v61  ;;  %1548 = vmatpush3.bf16.msra.mxu1 %v1759_v16 }
 0x157   :  { %965 = vmatprep.subr.bf16.mxu0 %v1740_v0  ;;  %1549 = vmatprep.subr.bf16.mxu1 %v1760_v17 }
 0x15a   :  { %966 = vmatpush1.bf16.msra.mxu0 %v1738_v2  ;;  %1550 = vmatpush3.bf16.msra.mxu1 %v1761_v18 }
 0x15b   :  { %967 = vmatprep.subr.bf16.mxu0 %v1743_v3  ;;  %1551 = vmatprep.subr.bf16.mxu1 %v1762_v19 }
 0x15e   :  { %968 = vmatpush1.bf16.msra.mxu0 %v1741_v4  ;;  %1552 = vmatpush3.bf16.msra.mxu1 %v1763_v20 }
 0x15f   :  { %969 = vmatprep.subr.bf16.mxu0 %v1746_v5  ;;  %1553 = vmatprep.subr.bf16.mxu1 %v1764_v21 }
 0x162   :  { %970 = vmatpush1.bf16.msra.mxu0 %v1744_v6  ;;  %1554 = vmatpush3.bf16.msra.mxu1 %v1765_v22 }
 0x163   :  { %971 = vmatprep.subr.bf16.mxu0 %v1749_v7  ;;  %1555 = vmatprep.subr.bf16.mxu1 %v1766_v23  ;;  %v1476_v7 = vld [vmem:[%s2053_s6] ss:$0 sm:$0xff] }
 0x166   :  { %972 = vmatpush1.bf16.msra.mxu0 %v1747_v8  ;;  %1556 = vmatpush3.bf16.msra.mxu1 %v1767_v24 }
 0x167   :  { %973 = vmatprep.subr.bf16.mxu0 %v1752_v9  ;;  %1557 = vmatprep.subr.bf16.mxu1 %v1768_v25 }
 0x16a   :  { %974 = vmatpush1.bf16.msra.mxu0 %v1750_v10  ;;  %1558 = vmatpush3.bf16.msra.mxu1 %v1769_v26 }
 0x16b   :  { %975 = vmatprep.subr.bf16.mxu0 %v1755_v11  ;;  %1559 = vmatprep.subr.bf16.mxu1 %v1770_v27 }
 0x16e   :  { %976 = vmatpush1.bf16.msra.mxu0 %v1753_v12  ;;  %1560 = vmatpush3.bf16.msra.mxu1 %v1771_v28 }
 0x16f   :  { %1576 = vmatprep.subr.bf16.mxu1 %v1911_v29 }
 0x171   :  { %978 = vmatmul.mubr.bf16.vlgmr.msra.gmra.mrb[4].mxu0 %v245_v58  ;;  %v1777_v58 = vld [vmem:[#allocation8 + $0xa8] sm:$0xff]  }
 0x204   :  { %v1517_v30 = vpop.f32.mrb[4].mxu1 }
 0x205   :  { %v1518_v31 = vpop.f32.mrb[5].mxu1 }
 0x206   :  { %v1519_v32 = vadd.f32 %v1518_v31, %v1517_v30  ;;  %v1520_v33 = vpop.f32.mrb[6].mxu1 }
 0x207   :  { %v1521_v34 = vpop.f32.mrb[7].mxu1 }
 0x208   :  { %v1021_v40 = vadd.f32 %v1519_v32, %v388_v36 }
 0x224   :  { %v1539_v37 = vpop.f32.mrb[8].mxu1 }
 0x225   :  { %v1540_v38 = vpop.f32.mrb[9].mxu1 }
 0x226   :  { %v1541_v41 = vadd.f32 %v1540_v38, %v1539_v37  ;;  %v1542_v42 = vpop.f32.mrb[10].mxu1 }
 0x227   :  { %v1543_v43 = vpop.f32.mrb[11].mxu1 }
 0x228   :  { %v1061_v44 = vadd.f32 %v1541_v41, %v1021_v40 }
 0x22a   :  { %v1068_v61 = vmax.f32 %v1061_v44, 0.0 }
 0x22c   :  { %v1071_v0 = vpack.c.bf16 %v1068_v61, %v1068_v61 }
 0x244   :  { %v979_v47 = vpop.f32.mrb[4].mxu0 }
 0x245   :  { %v1596_v48 = vadd.f32 %v979_v47, %v380_v45  ;;  %v981_v49 = vpop.f32.mrb[5].mxu0 }
 0x246   :  { %v1597_v50 = vadd.f32 %v981_v49, %v384_v46  ;;  %v983_v51 = vpop.f32.mrb[6].mxu0 }
 0x247   :  { %v1066_v52 = vmax.f32 %v1596_v48, 0.0  ;;  %v984_v39 = vpop.f32.mrb[7].mxu0 }
 0x248   :  { %v1067_v53 = vmax.f32 %v1597_v50, 0.0 }
 0x249   :  { %v1069_v56 = vpack.c.bf16 %v1066_v52, %v1066_v52 }
 0x24a   :  { %v1070_v54 = vpack.c.bf16 %v1067_v53, %v1067_v53 }
 0x24c   :  { %1303 = vmatprep.mubr.bf16.mxu1 %v1070_v54 }
 0x24d   :  { %1304 = vmatmul.mubr.bf16.vlgmr.msra.gmra.mrb[12].mxu1 %v1069_v56 }
 0x24e   :  { %1577 = vmatpush3.bf16.msra.mxu1 %v1772_v55  ;;  %1592 = vmatprep.mubr.msk.bf16.mxu1 %vm1912_vm1, %v1911_v29 }
 0x24f   :  { %1578 = vmatprep.subr.bf16.mxu1 %v1911_v29 }
 0x252   :  { %1579 = vmatpush3.bf16.msra.mxu1 %v1773_v57 }
 0x253   :  { %1580 = vmatprep.subr.bf16.mxu1 %v1911_v29 }
 0x256   :  { %1581 = vmatpush3.bf16.msra.mxu1 %v1774_v62 }
 0x257   :  { %1582 = vmatprep.subr.bf16.mxu1 %v1911_v29 }
 0x25a   :  { %1583 = vmatpush3.bf16.msra.mxu1 %v1775_v63 }
 0x25b   :  { %1584 = vmatprep.subr.bf16.mxu1 %v1911_v29 }
 0x25e   :  { %1585 = vmatpush3.bf16.msra.mxu1 %v1776_v1 }
 0x25f   :  { %1586 = vmatprep.subr.bf16.mxu1 %v1911_v29 }
 0x262   :  { %1587 = vmatpush3.bf16.msra.mxu1 %v1777_v58 }
 0x263   :  { %1588 = vmatprep.subr.bf16.mxu1 %v1911_v29 }
 0x266   :  { %1589 = vmatpush3.bf16.msra.mxu1 %v1778_v59 }
 0x267   :  { %1590 = vmatprep.subr.bf16.mxu1 %v1911_v29 }
 0x26a   :  { %1591 = vmatpush3.bf16.msra.mxu1 %v1779_v60 }
 0x26d   :  { %1593 = vmatmul.mubr.bf16.vlgmr.msra.gmra.mrb[16].mxu1 %v1071_v0 }
 0x320   :  { %v1561_v2 = vpop.f32.mrb[12].mxu1 }
 0x321   :  { %v1562_v3 = vpop.f32.mrb[13].mxu1 }
 0x322   :  { %v1563_v4 = vadd.f32 %v1562_v3, %v1561_v2  ;;  %v1564_v5 = vpop.f32.mrb[14].mxu1 }
 0x323   :  { %v1565_v6 = vpop.f32.mrb[15].mxu1 }
 0x324   :  { %v1306_v8 = vadd.f32 %v1563_v4, %v1476_v7 }
 0x340   :  { %v1345_v9 = vpop.f32.mrb[16].mxu1 }
 0x341   :  { %v1346_v10 = vadd.f32 %v1345_v9, %v1306_v8  ;;  %v1594_v11 = vpop.f32.mrb[17].mxu1 }
 0x342   :  { %v1348_v12 = vpop.f32.mrb[18].mxu1 }
 0x343   :  { %1780 = vtanh.f32 %v1346_v10  ;;  %v1595_v13 = vpop.f32.mrb[19].mxu1 }
 0x34d   :  { %v1781_v14 = vpop.eup %1780 }
 0x34e   :  { %1352 = vst [vmem:[#allocation10] sm:$0xff] %v1781_v14 }
 0x34f   :  { %1881 = shalt.err (!%p1878_p8)
}
 0x350   :  { %s1882_s12 = scalar_lea.hbm %s2054_s7, 128 }
 0x351   :  { %p1883_p9 = scmp.ne.s32.totalorder %s2054_s7, %s1882_s12  ;;  %p1886_p10 = scmp.lt.u32.totalorder %s1882_s12, %s2054_s7 }
 0x353   :  { %p1888_p11 = pnand %p1886_p10, %p1883_p9 }
 0x355   :  { %1891 = shalt.err (!%p1888_p11)
}
 0x356   :  { %1362 = dma.vmem_to_hbm [thread:$0]  %s1360_s9, 128, %s2054_s7, [#allocation4]  }
 0x357   :  { %1898 = dma.done.wait [#allocation4], 128  }
 0x358   :  { %1899 = vsyncadd [#allocation4], 4294967168 }
 0x359   :  { %1366 = vsyncpa [#allocation3], 1 }
 0x35a   :  { %1367 = vsyncpa [#allocation6], 1 }
 0x35b   :  { %1368 = vsyncpa [#allocation9], 1 }
 0x35c   :  { %1369 = vsyncpa [#allocation4], 1 }

</bundles_post_ra>
